<compile_context>
chip_gen: v7x
topology: tpu7x:2x2x1
jax: 0.10.0
libtpu: 0.0.40
codegen_flags: <defaults>
</compile_context>

<pallas_src>
import functools

import jax
import jax.numpy as jnp
from jax.experimental import pallas as pl
from jax.experimental.pallas import tpu as pltpu

EPS = 1e-5


def _round_up(x, m):
    return (x + m - 1) // m * m


@functools.partial(jax.jit, static_argnames=("stride", "padding", "max_pool"))
def conv_block_forward(x_nchw, weight, bias, gamma, beta, *, stride=1, padding=1, max_pool=2):
    """ConvBlock.forward: conv -> bn(train) -> relu -> maxpool(2).  NCHW in / NCHW out."""
    # TODO(synk): only the conv(groups=1, bias, stride=1) + BN(train) + ReLU + MaxPool2d(2)
    # configuration used by the prototypical-nets encoder is implemented (no relu6/sigmoid,
    # no use_bn=False / max_pool=None paths, no running-stats update).
    del bias  # exactly cancelled by the training-mode BN mean subtraction

    n, cin, h, w = x_nchw.shape
    cout, _, kh, kw = weight.shape
    assert stride == 1, "fused kernel implemented for stride=1"
    assert max_pool == 2, "fused epilogue implemented for MaxPool2d(2)"

    hp, wp = h + 2 * padding, w + 2 * padding
    oh, ow = hp - kh + 1, wp - kw + 1
    # TODO(synk): odd OH/OW would need stats-only handling of the dropped last row/col.
    assert oh % 2 == 0 and ow % 2 == 0, "OH/OW must be divisible by the pool size"
    oh2, ow2 = oh // 2, ow // 2

    K = kw * cin                    # contraction size of one kernel-row matmul
    Kp = _round_up(K, 16)           # bf16 sublane-packed contraction dim (kept small in HBM)
    Cp = _round_up(cout, 128)       # lane-dense output channels
    owp = _round_up(ow, 8)          # conv columns padded so every row group is sublane aligned
    rows_img = hp * owp             # patch-slab rows per image
    rows_y = oh * owp               # conv-output rows per image (padded cols included)

    # -------- wrapper glue (XLA): width-only im2col, ~kw-fold expansion of the input --------
    x_nhwc = jnp.transpose(x_nchw, (0, 2, 3, 1)).astype(jnp.bfloat16)
    xpad = jnp.pad(x_nhwc, ((0, 0), (padding, padding), (padding, padding), (0, 0)))
    pw = jnp.concatenate([xpad[:, :, j:j + ow, :] for j in range(kw)], axis=-1)  # (N,Hp,OW,K)
    # conv-column reorder [evens | odds]: the 4 taps of each 2x2 pool window become four
    # contiguous sublane runs inside the kernel.
    pw = jnp.concatenate([pw[:, :, 0::2, :], pw[:, :, 1::2, :]], axis=2)
    pw = jnp.pad(pw, ((0, 0), (0, 0), (0, owp - ow), (0, Kp - K)))
    pw = pw.reshape(n * rows_img, Kp)                                             # (N*Hp*OWp, Kp)

    # torch weight (Cout, Cin, KH, KW) -> kh stacked (kw*Cin, Cout) matrices, padded, bf16.
    w_rows = jnp.transpose(weight, (2, 3, 1, 0)).reshape(kh, K, cout)
    w_rows = jnp.pad(w_rows, ((0, 0), (0, Kp - K), (0, Cp - cout))).astype(jnp.bfloat16)

    # Zero-padded K lanes / conv columns contribute exactly 0 to the conv output and the BN
    # sums, so all divisors below use the true element count.
    nc = 2 if (n % 2 == 0 and n >= 2) else 1   # split stats over 2 accumulators (v7x: 2 TCs)
    n_in = n // nc

    cp_stats = pltpu.CompilerParams(dimension_semantics=("parallel", "arbitrary"),
                                    vmem_limit_bytes=40 * 1024 * 1024)
    cp_epi = pltpu.CompilerParams(dimension_semantics=("parallel",),
                                  vmem_limit_bytes=40 * 1024 * 1024)

    def conv_into(pw_ref, w_ref, acc_ref):
        # acc <- conv output of one image: kh accumulated (rows_y, Kp) x (Kp, Cp) matmuls,
        # each an aligned sublane slice of the per-image patch slab (in-kernel kh taps).
        acc_ref[...] = jnp.dot(pw_ref[0:rows_y, :], w_ref[0],
                               preferred_element_type=jnp.float32)
        for i in range(1, kh):
            acc_ref[...] += jnp.dot(pw_ref[i * owp:i * owp + rows_y, :], w_ref[i],
                                    preferred_element_type=jnp.float32)

    # ---- phase 1: per-channel sum / sum-of-squares of the conv output (one sweep) ----------
    def stats_kernel(pw_ref, w_ref, s_ref, acc_ref):
        @pl.when(pl.program_id(1) == 0)
        def _():
            s_ref[...] = jnp.zeros_like(s_ref)
        conv_into(pw_ref, w_ref, acc_ref)
        y = acc_ref[...]
        s = jnp.sum(y, axis=0, keepdims=True)
        ss = jnp.sum(y * y, axis=0, keepdims=True)
        s_ref[...] = s_ref[...] + jnp.concatenate([s, ss], axis=0)

    stats = pl.pallas_call(
        stats_kernel,
        out_shape=jax.ShapeDtypeStruct((2, nc * Cp), jnp.float32),
        grid_spec=pltpu.PrefetchScalarGridSpec(
            num_scalar_prefetch=0,
            grid=(nc, n_in),
            in_specs=[
                pl.BlockSpec((rows_img, Kp), lambda c, i: (c * n_in + i, 0)),
                pl.BlockSpec((kh, Kp, Cp), lambda c, i: (0, 0, 0)),
            ],
            out_specs=pl.BlockSpec((2, Cp), lambda c, i: (0, c)),
            scratch_shapes=[pltpu.VMEM((rows_y, Cp), jnp.float32)],
        ),
        compiler_params=cp_stats,
    )(pw, w_rows)

    # ---- BN affine from the partial sums (tiny XLA glue on (Cp,)-vectors) ------------------
    stats = jnp.sum(stats.reshape(2, nc, Cp), axis=1)            # (2, Cp)
    inv_cnt = 1.0 / float(n * oh * ow)
    mean = stats[0] * inv_cnt
    var = jnp.maximum(stats[1] * inv_cnt - mean * mean, 0.0)     # clamp cancellation noise
    gamma_p = jnp.pad(gamma.astype(jnp.float32), (0, Cp - cout))
    beta_p = jnp.pad(beta.astype(jnp.float32), (0, Cp - cout))
    scale = (gamma_p * jax.lax.rsqrt(var + EPS)).reshape(1, Cp)
    shift = (beta_p - mean * scale[0]).reshape(1, Cp)

    # ---- phase 2: conv (recomputed) + BN affine + ReLU + 2x2 max-pool -----------------------
    # TODO(synk): for large-K layers (K > ~2*Cp, e.g. Cin=64 encoder layers) storing bf16 y
    # in phase 1 and reading it here would be less HBM traffic than re-reading the patch slab.
    def epilogue_kernel(scale_ref, shift_ref, pw_ref, w_ref, o_ref, acc_ref):
        conv_into(pw_ref, w_ref, acc_ref)
        sc = scale_ref[...]
        sh = shift_ref[...]

        def bn_relu(rows):
            # BN scale may be negative, so normalize each tap before the max.
            return jnp.maximum(rows * sc + sh, 0.0)

        for r2 in range(oh2):                           # static unroll over pooled rows
            base = 2 * r2 * owp
            t00 = bn_relu(acc_ref[base:base + ow2, :])                        # row 2r2,  even cols
            t01 = bn_relu(acc_ref[base + ow2:base + 2 * ow2, :])              # row 2r2,  odd  cols
            t10 = bn_relu(acc_ref[base + owp:base + owp + ow2, :])            # row 2r2+1, even
            t11 = bn_relu(acc_ref[base + owp + ow2:base + owp + 2 * ow2, :])  # row 2r2+1, odd
            o_ref[0, r2 * ow2:(r2 + 1) * ow2, :] = jnp.maximum(
                jnp.maximum(t00, t01), jnp.maximum(t10, t11))

    pooled = pl.pallas_call(
        epilogue_kernel,
        out_shape=jax.ShapeDtypeStruct((n, oh2 * ow2, Cp), jnp.float32),
        grid_spec=pltpu.PrefetchScalarGridSpec(
            num_scalar_prefetch=0,
            grid=(n,),
            in_specs=[
                pl.BlockSpec((1, Cp), lambda m: (0, 0)),
                pl.BlockSpec((1, Cp), lambda m: (0, 0)),
                pl.BlockSpec((rows_img, Kp), lambda m: (m, 0)),
                pl.BlockSpec((kh, Kp, Cp), lambda m: (0, 0, 0)),
            ],
            out_specs=pl.BlockSpec((1, oh2 * ow2, Cp), lambda m: (m, 0, 0)),
            scratch_shapes=[pltpu.VMEM((rows_y, Cp), jnp.float32)],
        ),
        compiler_params=cp_epi,
    )(scale, shift, pw, w_rows)

    # Strip channel padding, NHWC -> NCHW (PyTorch convention).
    # TODO(synk): for chained ConvBlocks keep bf16 NHWC between blocks and only convert
    # at the model boundary (halves the writeback and removes a relayout pass).
    out = pooled[:, :, :cout].reshape(n, oh2, ow2, cout)
    return jnp.transpose(out, (0, 3, 1, 2))


# ----------------------------------------------------------------------------
# Pure-JAX (f32) reference for validation
# ----------------------------------------------------------------------------
def reference(x_nchw, weight, bias, gamma, beta, stride=1, padding=1, max_pool=2):
    y = jax.lax.conv_general_dilated(
        x_nchw, weight, window_strides=(stride, stride),
        padding=((padding, padding), (padding, padding)),
        dimension_numbers=("NCHW", "OIHW", "NCHW"))
    y = y + bias[None, :, None, None]
    mean = jnp.mean(y, axis=(0, 2, 3), keepdims=True)
    var = jnp.mean((y - mean) ** 2, axis=(0, 2, 3), keepdims=True)
    y = gamma[None, :, None, None] * ((y - mean) * jax.lax.rsqrt(var + EPS)) + beta[None, :, None, None]
    y = jnp.maximum(y, 0.0)
    y = jax.lax.reduce_window(y, -jnp.inf, jax.lax.max,
                              (1, 1, max_pool, max_pool), (1, 1, max_pool, max_pool), "VALID")
    return y


if __name__ == "__main__":
    # ConvBlock(in_channels=4, out_channels=8, kernel_size=3, padding=1, max_pool=2)
    N, CIN, H, W = 2, 4, 16, 16
    COUT, KH, KW = 8, 3, 3

    key = jax.random.PRNGKey(0)
    kx, kw_, kb, kg, kbeta = jax.random.split(key, 5)
    x = jax.random.normal(kx, (N, CIN, H, W), dtype=jnp.float32)
    weight = jax.random.normal(kw_, (COUT, CIN, KH, KW), dtype=jnp.float32) * 0.1
    bias = jax.random.normal(kb, (COUT,), dtype=jnp.float32) * 0.1
    gamma = 1.0 + 0.1 * jax.random.normal(kg, (COUT,), dtype=jnp.float32)
    beta = 0.1 * jax.random.normal(kbeta, (COUT,), dtype=jnp.float32)

    out = conv_block_forward(x, weight, bias, gamma, beta, stride=1, padding=1, max_pool=2)
    out = jax.block_until_ready(out)

    ref = jax.block_until_ready(reference(x, weight, bias, gamma, beta))
    assert out.shape == (N, COUT, H // 2, W // 2), out.shape
    # bf16 MXU operands vs. an all-f32 reference -> allow ~1% deviation on O(1) outputs.
    assert jnp.allclose(out, ref, rtol=2e-2, atol=2e-2), float(jnp.max(jnp.abs(out - ref)))

    print("KERNEL_OK")
</pallas_src>

<mosaic_0001>
module attributes {stable_mosaic.version = 11 : i64} {
  func.func @stats_kernel(%arg0: i32, %arg1: i32, %arg2: memref<288x16xbf16, #tpu.memory_space<vmem>>, %arg3: memref<3x16x128xbf16, #tpu.memory_space<vmem>>, %arg4: memref<2x128xf32, #tpu.memory_space<vmem>>, %arg5: memref<256x128xf32, #tpu.memory_space<vmem>>) attributes {dimension_semantics = [#tpu.dimension_semantics<parallel>, #tpu.dimension_semantics<arbitrary>], iteration_bounds = array<i64: 2, 1>, scalar_prefetch = 0 : i64, scratch_operands = 1 : i64, tpu.core_type = #tpu.core_type<tc>, window_params = [{transform_indices = @transform_0, window_bounds = array<i64: 288, 16>}, {pipeline_mode = #tpu.pipeline_mode<synchronous>, transform_indices = @transform_1, window_bounds = array<i64: 3, 16, 128>}, {transform_indices = @transform_2, window_bounds = array<i64: 2, 128>}]} {
    %c0_i32 = arith.constant 0 : i32
    %0 = arith.cmpi eq, %arg1, %c0_i32 : i32
    %1 = arith.extui %0 : i1 to i32
    %c0_i32_0 = arith.constant 0 : i32
    %2 = arith.cmpi ne, %1, %c0_i32_0 : i32
    scf.if %2 {
      %cst_31 = arith.constant 0.000000e+00 : f32
      %32 = vector.broadcast %cst_31 : f32 to vector<2x128xf32>
      %c0_32 = arith.constant 0 : index
      %c0_33 = arith.constant 0 : index
      %33 = vector.load %arg4[%c0_32, %c0_33] : memref<2x128xf32, #tpu.memory_space<vmem>>, vector<2x128xf32>
      tpu.vector_store %arg4[%c0_32, %c0_33], %32 {strides = array<i32>} : memref<2x128xf32, #tpu.memory_space<vmem>>, vector<2x128xf32>,
    } else {
    }
    %c0 = arith.constant 0 : index
    %c0_1 = arith.constant 0 : index
    %3 = vector.load %arg2[%c0, %c0_1] : memref<288x16xbf16, #tpu.memory_space<vmem>>, vector<256x16xbf16>
    %c0_2 = arith.constant 0 : index
    %c0_3 = arith.constant 0 : index
    %c0_4 = arith.constant 0 : index
    %4 = vector.load %arg3[%c0_2, %c0_3, %c0_4] : memref<3x16x128xbf16, #tpu.memory_space<vmem>>, vector<1x16x128xbf16>
    %5 = vector.shape_cast %4 : vector<1x16x128xbf16> to vector<16x128xbf16>
    %cst = arith.constant dense<0.000000e+00> : vector<256x128xf32>
    %6 = tpu.matmul %3, %5, %cst {dimension_numbers = #tpu.dot_dimension_numbers<[1], [0], [0], [1], [0, 0, 1, 1], [], []>} : vector<256x16xbf16>, vector<16x128xbf16>, vector<256x128xf32> -> vector<256x128xf32>
    %c0_5 = arith.constant 0 : index
    %c0_6 = arith.constant 0 : index
    %7 = vector.load %arg5[%c0_5, %c0_6] : memref<256x128xf32, #tpu.memory_space<vmem>>, vector<256x128xf32>
    tpu.vector_store %arg5[%c0_5, %c0_6], %6 {strides = array<i32>} : memref<256x128xf32, #tpu.memory_space<vmem>>, vector<256x128xf32>,
    %c0_7 = arith.constant 0 : index
    %c0_8 = arith.constant 0 : index
    %8 = vector.load %arg5[%c0_7, %c0_8] : memref<256x128xf32, #tpu.memory_space<vmem>>, vector<256x128xf32>
    %c16 = arith.constant 16 : index
    %c0_9 = arith.constant 0 : index
    %9 = vector.load %arg2[%c16, %c0_9] : memref<288x16xbf16, #tpu.memory_space<vmem>>, vector<256x16xbf16>
    %c1 = arith.constant 1 : index
    %c0_10 = arith.constant 0 : index
    %c0_11 = arith.constant 0 : index
    %10 = vector.load %arg3[%c1, %c0_10, %c0_11] : memref<3x16x128xbf16, #tpu.memory_space<vmem>>, vector<1x16x128xbf16>
    %11 = vector.shape_cast %10 : vector<1x16x128xbf16> to vector<16x128xbf16>
    %cst_12 = arith.constant dense<0.000000e+00> : vector<256x128xf32>
    %12 = tpu.matmul %9, %11, %cst_12 {dimension_numbers = #tpu.dot_dimension_numbers<[1], [0], [0], [1], [0, 0, 1, 1], [], []>} : vector<256x16xbf16>, vector<16x128xbf16>, vector<256x128xf32> -> vector<256x128xf32>
    %13 = arith.addf %8, %12 : vector<256x128xf32>
    %c0_13 = arith.constant 0 : index
    %c0_14 = arith.constant 0 : index
    %14 = vector.load %arg5[%c0_13, %c0_14] : memref<256x128xf32, #tpu.memory_space<vmem>>, vector<256x128xf32>
    tpu.vector_store %arg5[%c0_13, %c0_14], %13 {strides = array<i32>} : memref<256x128xf32, #tpu.memory_space<vmem>>, vector<256x128xf32>,
    %c0_15 = arith.constant 0 : index
    %c0_16 = arith.constant 0 : index
    %15 = vector.load %arg5[%c0_15, %c0_16] : memref<256x128xf32, #tpu.memory_space<vmem>>, vector<256x128xf32>
    %c32 = arith.constant 32 : index
    %c0_17 = arith.constant 0 : index
    %16 = vector.load %arg2[%c32, %c0_17] : memref<288x16xbf16, #tpu.memory_space<vmem>>, vector<256x16xbf16>
    %c2 = arith.constant 2 : index
    %c0_18 = arith.constant 0 : index
    %c0_19 = arith.constant 0 : index
    %17 = vector.load %arg3[%c2, %c0_18, %c0_19] : memref<3x16x128xbf16, #tpu.memory_space<vmem>>, vector<1x16x128xbf16>
    %18 = vector.shape_cast %17 : vector<1x16x128xbf16> to vector<16x128xbf16>
    %cst_20 = arith.constant dense<0.000000e+00> : vector<256x128xf32>
    %19 = tpu.matmul %16, %18, %cst_20 {dimension_numbers = #tpu.dot_dimension_numbers<[1], [0], [0], [1], [0, 0, 1, 1], [], []>} : vector<256x16xbf16>, vector<16x128xbf16>, vector<256x128xf32> -> vector<256x128xf32>
    %20 = arith.addf %15, %19 : vector<256x128xf32>
    %c0_21 = arith.constant 0 : index
    %c0_22 = arith.constant 0 : index
    %21 = vector.load %arg5[%c0_21, %c0_22] : memref<256x128xf32, #tpu.memory_space<vmem>>, vector<256x128xf32>
    tpu.vector_store %arg5[%c0_21, %c0_22], %20 {strides = array<i32>} : memref<256x128xf32, #tpu.memory_space<vmem>>, vector<256x128xf32>,
    %c0_23 = arith.constant 0 : index
    %c0_24 = arith.constant 0 : index
    %22 = vector.load %arg5[%c0_23, %c0_24] : memref<256x128xf32, #tpu.memory_space<vmem>>, vector<256x128xf32>
    %cst_25 = arith.constant dense<0.000000e+00> : vector<128xf32>
    %23 = vector.multi_reduction <add>, %22, %cst_25 [0] : vector<256x128xf32> to vector<128xf32>
    %24 = vector.shape_cast %23 : vector<128xf32> to vector<1x128xf32>
    %25 = arith.mulf %22, %22 : vector<256x128xf32>
    %cst_26 = arith.constant dense<0.000000e+00> : vector<128xf32>
    %26 = vector.multi_reduction <add>, %25, %cst_26 [0] : vector<256x128xf32> to vector<128xf32>
    %27 = vector.shape_cast %26 : vector<128xf32> to vector<1x128xf32>
    %c0_27 = arith.constant 0 : index
    %c0_28 = arith.constant 0 : index
    %28 = vector.load %arg4[%c0_27, %c0_28] : memref<2x128xf32, #tpu.memory_space<vmem>>, vector<2x128xf32>
    %29 = tpu.concatenate %24, %27 in 0 : vector<1x128xf32>, vector<1x128xf32> -> vector<2x128xf32>
    %30 = arith.addf %28, %29 : vector<2x128xf32>
    %c0_29 = arith.constant 0 : index
    %c0_30 = arith.constant 0 : index
    %31 = vector.load %arg4[%c0_29, %c0_30] : memref<2x128xf32, #tpu.memory_space<vmem>>, vector<2x128xf32>
    tpu.vector_store %arg4[%c0_29, %c0_30], %30 {strides = array<i32>} : memref<2x128xf32, #tpu.memory_space<vmem>>, vector<2x128xf32>,
    return
  }
  func.func @transform_0(%arg0: i32, %arg1: i32) -> (i32, i32) {
    %c1_i32 = arith.constant 1 : i32
    %0 = arith.muli %arg0, %c1_i32 : i32
    %1 = arith.addi %0, %arg1 : i32
    %c0_i32 = arith.constant 0 : i32
    %c0_i32_0 = arith.constant 0 : i32
    return %1, %c0_i32 : i32, i32
  }
  func.func @transform_1(%arg0: i32, %arg1: i32) -> (i32, i32, i32) {
    %c0_i32 = arith.constant 0 : i32
    %c0_i32_0 = arith.constant 0 : i32
    %c0_i32_1 = arith.constant 0 : i32
    %c0_i32_2 = arith.constant 0 : i32
    return %c0_i32, %c0_i32_0, %c0_i32_1 : i32, i32, i32
  }
  func.func @transform_2(%arg0: i32, %arg1: i32) -> (i32, i32) {
    %c0_i32 = arith.constant 0 : i32
    %c0_i32_0 = arith.constant 0 : i32
    return %c0_i32, %arg0 : i32, i32
  }
}

module attributes {stable_mosaic.version = 11 : i64} {
  func.func @epilogue_kernel(%arg0: i32, %arg1: memref<1x128xf32, #tpu.memory_space<vmem>>, %arg2: memref<1x128xf32, #tpu.memory_space<vmem>>, %arg3: memref<288x16xbf16, #tpu.memory_space<vmem>>, %arg4: memref<3x16x128xbf16, #tpu.memory_space<vmem>>, %arg5: memref<1x64x128xf32, #tpu.memory_space<vmem>>, %arg6: memref<256x128xf32, #tpu.memory_space<vmem>>) attributes {dimension_semantics = [#tpu.dimension_semantics<parallel>], iteration_bounds = array<i64: 2>, scalar_prefetch = 0 : i64, scratch_operands = 1 : i64, tpu.core_type = #tpu.core_type<tc>, window_params = [{pipeline_mode = #tpu.pipeline_mode<synchronous>, transform_indices = @transform_0, window_bounds = array<i64: 1, 128>}, {pipeline_mode = #tpu.pipeline_mode<synchronous>, transform_indices = @transform_1, window_bounds = array<i64: 1, 128>}, {transform_indices = @transform_2, window_bounds = array<i64: 288, 16>}, {pipeline_mode = #tpu.pipeline_mode<synchronous>, transform_indices = @transform_3, window_bounds = array<i64: 3, 16, 128>}, {transform_indices = @transform_4, window_bounds = array<i64: 1, 64, 128>}]} {
    %c0 = arith.constant 0 : index
    %c0_0 = arith.constant 0 : index
    %0 = vector.load %arg3[%c0, %c0_0] : memref<288x16xbf16, #tpu.memory_space<vmem>>, vector<256x16xbf16>
    %c0_1 = arith.constant 0 : index
    %c0_2 = arith.constant 0 : index
    %c0_3 = arith.constant 0 : index
    %1 = vector.load %arg4[%c0_1, %c0_2, %c0_3] : memref<3x16x128xbf16, #tpu.memory_space<vmem>>, vector<1x16x128xbf16>
    %2 = vector.shape_cast %1 : vector<1x16x128xbf16> to vector<16x128xbf16>
    %cst = arith.constant dense<0.000000e+00> : vector<256x128xf32>
    %3 = tpu.matmul %0, %2, %cst {dimension_numbers = #tpu.dot_dimension_numbers<[1], [0], [0], [1], [0, 0, 1, 1], [], []>} : vector<256x16xbf16>, vector<16x128xbf16>, vector<256x128xf32> -> vector<256x128xf32>
    %c0_4 = arith.constant 0 : index
    %c0_5 = arith.constant 0 : index
    %4 = vector.load %arg6[%c0_4, %c0_5] : memref<256x128xf32, #tpu.memory_space<vmem>>, vector<256x128xf32>
    tpu.vector_store %arg6[%c0_4, %c0_5], %3 {strides = array<i32>} : memref<256x128xf32, #tpu.memory_space<vmem>>, vector<256x128xf32>,
    %c0_6 = arith.constant 0 : index
    %c0_7 = arith.constant 0 : index
    %5 = vector.load %arg6[%c0_6, %c0_7] : memref<256x128xf32, #tpu.memory_space<vmem>>, vector<256x128xf32>
    %c16 = arith.constant 16 : index
    %c0_8 = arith.constant 0 : index
    %6 = vector.load %arg3[%c16, %c0_8] : memref<288x16xbf16, #tpu.memory_space<vmem>>, vector<256x16xbf16>
    %c1 = arith.constant 1 : index
    %c0_9 = arith.constant 0 : index
    %c0_10 = arith.constant 0 : index
    %7 = vector.load %arg4[%c1, %c0_9, %c0_10] : memref<3x16x128xbf16, #tpu.memory_space<vmem>>, vector<1x16x128xbf16>
    %8 = vector.shape_cast %7 : vector<1x16x128xbf16> to vector<16x128xbf16>
    %cst_11 = arith.constant dense<0.000000e+00> : vector<256x128xf32>
    %9 = tpu.matmul %6, %8, %cst_11 {dimension_numbers = #tpu.dot_dimension_numbers<[1], [0], [0], [1], [0, 0, 1, 1], [], []>} : vector<256x16xbf16>, vector<16x128xbf16>, vector<256x128xf32> -> vector<256x128xf32>
    %10 = arith.addf %5, %9 : vector<256x128xf32>
    %c0_12 = arith.constant 0 : index
    %c0_13 = arith.constant 0 : index
    %11 = vector.load %arg6[%c0_12, %c0_13] : memref<256x128xf32, #tpu.memory_space<vmem>>, vector<256x128xf32>
    tpu.vector_store %arg6[%c0_12, %c0_13], %10 {strides = array<i32>} : memref<256x128xf32, #tpu.memory_space<vmem>>, vector<256x128xf32>,
    %c0_14 = arith.constant 0 : index
    %c0_15 = arith.constant 0 : index
    %12 = vector.load %arg6[%c0_14, %c0_15] : memref<256x128xf32, #tpu.memory_space<vmem>>, vector<256x128xf32>
    %c32 = arith.constant 32 : index
    %c0_16 = arith.constant 0 : index
    %13 = vector.load %arg3[%c32, %c0_16] : memref<288x16xbf16, #tpu.memory_space<vmem>>, vector<256x16xbf16>
    %c2 = arith.constant 2 : index
    %c0_17 = arith.constant 0 : index
    %c0_18 = arith.constant 0 : index
    %14 = vector.load %arg4[%c2, %c0_17, %c0_18] : memref<3x16x128xbf16, #tpu.memory_space<vmem>>, vector<1x16x128xbf16>
    %15 = vector.shape_cast %14 : vector<1x16x128xbf16> to vector<16x128xbf16>
    %cst_19 = arith.constant dense<0.000000e+00> : vector<256x128xf32>
    %16 = tpu.matmul %13, %15, %cst_19 {dimension_numbers = #tpu.dot_dimension_numbers<[1], [0], [0], [1], [0, 0, 1, 1], [], []>} : vector<256x16xbf16>, vector<16x128xbf16>, vector<256x128xf32> -> vector<256x128xf32>
    %17 = arith.addf %12, %16 : vector<256x128xf32>
    %c0_20 = arith.constant 0 : index
    %c0_21 = arith.constant 0 : index
    %18 = vector.load %arg6[%c0_20, %c0_21] : memref<256x128xf32, #tpu.memory_space<vmem>>, vector<256x128xf32>
    tpu.vector_store %arg6[%c0_20, %c0_21], %17 {strides = array<i32>} : memref<256x128xf32, #tpu.memory_space<vmem>>, vector<256x128xf32>,
    %c0_22 = arith.constant 0 : index
    %c0_23 = arith.constant 0 : index
    %19 = vector.load %arg1[%c0_22, %c0_23] : memref<1x128xf32, #tpu.memory_space<vmem>>, vector<1x128xf32>
    %c0_24 = arith.constant 0 : index
    %c0_25 = arith.constant 0 : index
    %20 = vector.load %arg2[%c0_24, %c0_25] : memref<1x128xf32, #tpu.memory_space<vmem>>, vector<1x128xf32>
    %c0_26 = arith.constant 0 : index
    %c0_27 = arith.constant 0 : index
    %21 = vector.load %arg6[%c0_26, %c0_27] : memref<256x128xf32, #tpu.memory_space<vmem>>, vector<8x128xf32>
    %22 = vector.broadcast %19 : vector<1x128xf32> to vector<8x128xf32>
    %23 = arith.mulf %21, %22 : vector<8x128xf32>
    %24 = vector.broadcast %20 : vector<1x128xf32> to vector<8x128xf32>
    %25 = arith.addf %23, %24 : vector<8x128xf32>
    %cst_28 = arith.constant 0.000000e+00 : f32
    %26 = vector.broadcast %cst_28 : f32 to vector<8x128xf32>
    %27 = arith.maximumf %25, %26 : vector<8x128xf32>
    %c8 = arith.constant 8 : index
    %c0_29 = arith.constant 0 : index
    %28 = vector.load %arg6[%c8, %c0_29] : memref<256x128xf32, #tpu.memory_space<vmem>>, vector<8x128xf32>
    %29 = vector.broadcast %19 : vector<1x128xf32> to vector<8x128xf32>
    %30 = arith.mulf %28, %29 : vector<8x128xf32>
    %31 = vector.broadcast %20 : vector<1x128xf32> to vector<8x128xf32>
    %32 = arith.addf %30, %31 : vector<8x128xf32>
    %cst_30 = arith.constant 0.000000e+00 : f32
    %33 = vector.broadcast %cst_30 : f32 to vector<8x128xf32>
    %34 = arith.maximumf %32, %33 : vector<8x128xf32>
    %c16_31 = arith.constant 16 : index
    %c0_32 = arith.constant 0 : index
    %35 = vector.load %arg6[%c16_31, %c0_32] : memref<256x128xf32, #tpu.memory_space<vmem>>, vector<8x128xf32>
    %36 = vector.broadcast %19 : vector<1x128xf32> to vector<8x128xf32>
    %37 = arith.mulf %35, %36 : vector<8x128xf32>
    %38 = vector.broadcast %20 : vector<1x128xf32> to vector<8x128xf32>
    %39 = arith.addf %37, %38 : vector<8x128xf32>
    %cst_33 = arith.constant 0.000000e+00 : f32
    %40 = vector.broadcast %cst_33 : f32 to vector<8x128xf32>
    %41 = arith.maximumf %39, %40 : vector<8x128xf32>
    %c24 = arith.constant 24 : index
    %c0_34 = arith.constant 0 : index
    %42 = vector.load %arg6[%c24, %c0_34] : memref<256x128xf32, #tpu.memory_space<vmem>>, vector<8x128xf32>
    %43 = vector.broadcast %19 : vector<1x128xf32> to vector<8x128xf32>
    %44 = arith.mulf %42, %43 : vector<8x128xf32>
    %45 = vector.broadcast %20 : vector<1x128xf32> to vector<8x128xf32>
    %46 = arith.addf %44, %45 : vector<8x128xf32>
    %cst_35 = arith.constant 0.000000e+00 : f32
    %47 = vector.broadcast %cst_35 : f32 to vector<8x128xf32>
    %48 = arith.maximumf %46, %47 : vector<8x128xf32>
    %49 = arith.maximumf %27, %34 : vector<8x128xf32>
    %50 = arith.maximumf %41, %48 : vector<8x128xf32>
    %51 = arith.maximumf %49, %50 : vector<8x128xf32>
    %c0_36 = arith.constant 0 : index
    %c0_37 = arith.constant 0 : index
    %c0_38 = arith.constant 0 : index
    %52 = vector.load %arg5[%c0_36, %c0_37, %c0_38] : memref<1x64x128xf32, #tpu.memory_space<vmem>>, vector<1x8x128xf32>
    %53 = vector.shape_cast %52 : vector<1x8x128xf32> to vector<8x128xf32>
    %54 = vector.shape_cast %51 : vector<8x128xf32> to vector<1x8x128xf32>
    tpu.vector_store %arg5[%c0_36, %c0_37, %c0_38], %54 {strides = array<i32>} : memref<1x64x128xf32, #tpu.memory_space<vmem>>, vector<1x8x128xf32>,
    %c32_39 = arith.constant 32 : index
    %c0_40 = arith.constant 0 : index
    %55 = vector.load %arg6[%c32_39, %c0_40] : memref<256x128xf32, #tpu.memory_space<vmem>>, vector<8x128xf32>
    %56 = vector.broadcast %19 : vector<1x128xf32> to vector<8x128xf32>
    %57 = arith.mulf %55, %56 : vector<8x128xf32>
    %58 = vector.broadcast %20 : vector<1x128xf32> to vector<8x128xf32>
    %59 = arith.addf %57, %58 : vector<8x128xf32>
    %cst_41 = arith.constant 0.000000e+00 : f32
    %60 = vector.broadcast %cst_41 : f32 to vector<8x128xf32>
    %61 = arith.maximumf %59, %60 : vector<8x128xf32>
    %c40 = arith.constant 40 : index
    %c0_42 = arith.constant 0 : index
    %62 = vector.load %arg6[%c40, %c0_42] : memref<256x128xf32, #tpu.memory_space<vmem>>, vector<8x128xf32>
    %63 = vector.broadcast %19 : vector<1x128xf32> to vector<8x128xf32>
    %64 = arith.mulf %62, %63 : vector<8x128xf32>
    %65 = vector.broadcast %20 : vector<1x128xf32> to vector<8x128xf32>
    %66 = arith.addf %64, %65 : vector<8x128xf32>
    %cst_43 = arith.constant 0.000000e+00 : f32
    %67 = vector.broadcast %cst_43 : f32 to vector<8x128xf32>
    %68 = arith.maximumf %66, %67 : vector<8x128xf32>
    %c48 = arith.constant 48 : index
    %c0_44 = arith.constant 0 : index
    %69 = vector.load %arg6[%c48, %c0_44] : memref<256x128xf32, #tpu.memory_space<vmem>>, vector<8x128xf32>
    %70 = vector.broadcast %19 : vector<1x128xf32> to vector<8x128xf32>
    %71 = arith.mulf %69, %70 : vector<8x128xf32>
    %72 = vector.broadcast %20 : vector<1x128xf32> to vector<8x128xf32>
    %73 = arith.addf %71, %72 : vector<8x128xf32>
    %cst_45 = arith.constant 0.000000e+00 : f32
    %74 = vector.broadcast %cst_45 : f32 to vector<8x128xf32>
    %75 = arith.maximumf %73, %74 : vector<8x128xf32>
    %c56 = arith.constant 56 : index
    %c0_46 = arith.constant 0 : index
    %76 = vector.load %arg6[%c56, %c0_46] : memref<256x128xf32, #tpu.memory_space<vmem>>, vector<8x128xf32>
    %77 = vector.broadcast %19 : vector<1x128xf32> to vector<8x128xf32>
    %78 = arith.mulf %76, %77 : vector<8x128xf32>
    %79 = vector.broadcast %20 : vector<1x128xf32> to vector<8x128xf32>
    %80 = arith.addf %78, %79 : vector<8x128xf32>
    %cst_47 = arith.constant 0.000000e+00 : f32
    %81 = vector.broadcast %cst_47 : f32 to vector<8x128xf32>
    %82 = arith.maximumf %80, %81 : vector<8x128xf32>
    %83 = arith.maximumf %61, %68 : vector<8x128xf32>
    %84 = arith.maximumf %75, %82 : vector<8x128xf32>
    %85 = arith.maximumf %83, %84 : vector<8x128xf32>
    %c0_48 = arith.constant 0 : index
    %c8_49 = arith.constant 8 : index
    %c0_50 = arith.constant 0 : index
    %86 = vector.load %arg5[%c0_48, %c8_49, %c0_50] : memref<1x64x128xf32, #tpu.memory_space<vmem>>, vector<1x8x128xf32>
    %87 = vector.shape_cast %86 : vector<1x8x128xf32> to vector<8x128xf32>
    %88 = vector.shape_cast %85 : vector<8x128xf32> to vector<1x8x128xf32>
    tpu.vector_store %arg5[%c0_48, %c8_49, %c0_50], %88 {strides = array<i32>} : memref<1x64x128xf32, #tpu.memory_space<vmem>>, vector<1x8x128xf32>,
    %c64 = arith.constant 64 : index
    %c0_51 = arith.constant 0 : index
    %89 = vector.load %arg6[%c64, %c0_51] : memref<256x128xf32, #tpu.memory_space<vmem>>, vector<8x128xf32>
    %90 = vector.broadcast %19 : vector<1x128xf32> to vector<8x128xf32>
    %91 = arith.mulf %89, %90 : vector<8x128xf32>
    %92 = vector.broadcast %20 : vector<1x128xf32> to vector<8x128xf32>
    %93 = arith.addf %91, %92 : vector<8x128xf32>
    %cst_52 = arith.constant 0.000000e+00 : f32
    %94 = vector.broadcast %cst_52 : f32 to vector<8x128xf32>
    %95 = arith.maximumf %93, %94 : vector<8x128xf32>
    %c72 = arith.constant 72 : index
    %c0_53 = arith.constant 0 : index
    %96 = vector.load %arg6[%c72, %c0_53] : memref<256x128xf32, #tpu.memory_space<vmem>>, vector<8x128xf32>
    %97 = vector.broadcast %19 : vector<1x128xf32> to vector<8x128xf32>
    %98 = arith.mulf %96, %97 : vector<8x128xf32>
    %99 = vector.broadcast %20 : vector<1x128xf32> to vector<8x128xf32>
    %100 = arith.addf %98, %99 : vector<8x128xf32>
    %cst_54 = arith.constant 0.000000e+00 : f32
    %101 = vector.broadcast %cst_54 : f32 to vector<8x128xf32>
    %102 = arith.maximumf %100, %101 : vector<8x128xf32>
    %c80 = arith.constant 80 : index
    %c0_55 = arith.constant 0 : index
    %103 = vector.load %arg6[%c80, %c0_55] : memref<256x128xf32, #tpu.memory_space<vmem>>, vector<8x128xf32>
    %104 = vector.broadcast %19 : vector<1x128xf32> to vector<8x128xf32>
    %105 = arith.mulf %103, %104 : vector<8x128xf32>
    %106 = vector.broadcast %20 : vector<1x128xf32> to vector<8x128xf32>
    %107 = arith.addf %105, %106 : vector<8x128xf32>
    %cst_56 = arith.constant 0.000000e+00 : f32
    %108 = vector.broadcast %cst_56 : f32 to vector<8x128xf32>
    %109 = arith.maximumf %107, %108 : vector<8x128xf32>
    %c88 = arith.constant 88 : index
    %c0_57 = arith.constant 0 : index
    %110 = vector.load %arg6[%c88, %c0_57] : memref<256x128xf32, #tpu.memory_space<vmem>>, vector<8x128xf32>
    %111 = vector.broadcast %19 : vector<1x128xf32> to vector<8x128xf32>
    %112 = arith.mulf %110, %111 : vector<8x128xf32>
    %113 = vector.broadcast %20 : vector<1x128xf32> to vector<8x128xf32>
    %114 = arith.addf %112, %113 : vector<8x128xf32>
    %cst_58 = arith.constant 0.000000e+00 : f32
    %115 = vector.broadcast %cst_58 : f32 to vector<8x128xf32>
    %116 = arith.maximumf %114, %115 : vector<8x128xf32>
    %117 = arith.maximumf %95, %102 : vector<8x128xf32>
    %118 = arith.maximumf %109, %116 : vector<8x128xf32>
    %119 = arith.maximumf %117, %118 : vector<8x128xf32>
    %c0_59 = arith.constant 0 : index
    %c16_60 = arith.constant 16 : index
    %c0_61 = arith.constant 0 : index
    %120 = vector.load %arg5[%c0_59, %c16_60, %c0_61] : memref<1x64x128xf32, #tpu.memory_space<vmem>>, vector<1x8x128xf32>
    %121 = vector.shape_cast %120 : vector<1x8x128xf32> to vector<8x128xf32>
    %122 = vector.shape_cast %119 : vector<8x128xf32> to vector<1x8x128xf32>
    tpu.vector_store %arg5[%c0_59, %c16_60, %c0_61], %122 {strides = array<i32>} : memref<1x64x128xf32, #tpu.memory_space<vmem>>, vector<1x8x128xf32>,
    %c96 = arith.constant 96 : index
    %c0_62 = arith.constant 0 : index
    %123 = vector.load %arg6[%c96, %c0_62] : memref<256x128xf32, #tpu.memory_space<vmem>>, vector<8x128xf32>
    %124 = vector.broadcast %19 : vector<1x128xf32> to vector<8x128xf32>
    %125 = arith.mulf %123, %124 : vector<8x128xf32>
    %126 = vector.broadcast %20 : vector<1x128xf32> to vector<8x128xf32>
    %127 = arith.addf %125, %126 : vector<8x128xf32>
    %cst_63 = arith.constant 0.000000e+00 : f32
    %128 = vector.broadcast %cst_63 : f32 to vector<8x128xf32>
    %129 = arith.maximumf %127, %128 : vector<8x128xf32>
    %c104 = arith.constant 104 : index
    %c0_64 = arith.constant 0 : index
    %130 = vector.load %arg6[%c104, %c0_64] : memref<256x128xf32, #tpu.memory_space<vmem>>, vector<8x128xf32>
    %131 = vector.broadcast %19 : vector<1x128xf32> to vector<8x128xf32>
    %132 = arith.mulf %130, %131 : vector<8x128xf32>
    %133 = vector.broadcast %20 : vector<1x128xf32> to vector<8x128xf32>
    %134 = arith.addf %132, %133 : vector<8x128xf32>
    %cst_65 = arith.constant 0.000000e+00 : f32
    %135 = vector.broadcast %cst_65 : f32 to vector<8x128xf32>
    %136 = arith.maximumf %134, %135 : vector<8x128xf32>
    %c112 = arith.constant 112 : index
    %c0_66 = arith.constant 0 : index
    %137 = vector.load %arg6[%c112, %c0_66] : memref<256x128xf32, #tpu.memory_space<vmem>>, vector<8x128xf32>
    %138 = vector.broadcast %19 : vector<1x128xf32> to vector<8x128xf32>
    %139 = arith.mulf %137, %138 : vector<8x128xf32>
    %140 = vector.broadcast %20 : vector<1x128xf32> to vector<8x128xf32>
    %141 = arith.addf %139, %140 : vector<8x128xf32>
    %cst_67 = arith.constant 0.000000e+00 : f32
    %142 = vector.broadcast %cst_67 : f32 to vector<8x128xf32>
    %143 = arith.maximumf %141, %142 : vector<8x128xf32>
    %c120 = arith.constant 120 : index
    %c0_68 = arith.constant 0 : index
    %144 = vector.load %arg6[%c120, %c0_68] : memref<256x128xf32, #tpu.memory_space<vmem>>, vector<8x128xf32>
    %145 = vector.broadcast %19 : vector<1x128xf32> to vector<8x128xf32>
    %146 = arith.mulf %144, %145 : vector<8x128xf32>
    %147 = vector.broadcast %20 : vector<1x128xf32> to vector<8x128xf32>
    %148 = arith.addf %146, %147 : vector<8x128xf32>
    %cst_69 = arith.constant 0.000000e+00 : f32
    %149 = vector.broadcast %cst_69 : f32 to vector<8x128xf32>
    %150 = arith.maximumf %148, %149 : vector<8x128xf32>
    %151 = arith.maximumf %129, %136 : vector<8x128xf32>
    %152 = arith.maximumf %143, %150 : vector<8x128xf32>
    %153 = arith.maximumf %151, %152 : vector<8x128xf32>
    %c0_70 = arith.constant 0 : index
    %c24_71 = arith.constant 24 : index
    %c0_72 = arith.constant 0 : index
    %154 = vector.load %arg5[%c0_70, %c24_71, %c0_72] : memref<1x64x128xf32, #tpu.memory_space<vmem>>, vector<1x8x128xf32>
    %155 = vector.shape_cast %154 : vector<1x8x128xf32> to vector<8x128xf32>
    %156 = vector.shape_cast %153 : vector<8x128xf32> to vector<1x8x128xf32>
    tpu.vector_store %arg5[%c0_70, %c24_71, %c0_72], %156 {strides = array<i32>} : memref<1x64x128xf32, #tpu.memory_space<vmem>>, vector<1x8x128xf32>,
    %c128 = arith.constant 128 : index
    %c0_73 = arith.constant 0 : index
    %157 = vector.load %arg6[%c128, %c0_73] : memref<256x128xf32, #tpu.memory_space<vmem>>, vector<8x128xf32>
    %158 = vector.broadcast %19 : vector<1x128xf32> to vector<8x128xf32>
    %159 = arith.mulf %157, %158 : vector<8x128xf32>
    %160 = vector.broadcast %20 : vector<1x128xf32> to vector<8x128xf32>
    %161 = arith.addf %159, %160 : vector<8x128xf32>
    %cst_74 = arith.constant 0.000000e+00 : f32
    %162 = vector.broadcast %cst_74 : f32 to vector<8x128xf32>
    %163 = arith.maximumf %161, %162 : vector<8x128xf32>
    %c136 = arith.constant 136 : index
    %c0_75 = arith.constant 0 : index
    %164 = vector.load %arg6[%c136, %c0_75] : memref<256x128xf32, #tpu.memory_space<vmem>>, vector<8x128xf32>
    %165 = vector.broadcast %19 : vector<1x128xf32> to vector<8x128xf32>
    %166 = arith.mulf %164, %165 : vector<8x128xf32>
    %167 = vector.broadcast %20 : vector<1x128xf32> to vector<8x128xf32>
    %168 = arith.addf %166, %167 : vector<8x128xf32>
    %cst_76 = arith.constant 0.000000e+00 : f32
    %169 = vector.broadcast %cst_76 : f32 to vector<8x128xf32>
    %170 = arith.maximumf %168, %169 : vector<8x128xf32>
    %c144 = arith.constant 144 : index
    %c0_77 = arith.constant 0 : index
    %171 = vector.load %arg6[%c144, %c0_77] : memref<256x128xf32, #tpu.memory_space<vmem>>, vector<8x128xf32>
    %172 = vector.broadcast %19 : vector<1x128xf32> to vector<8x128xf32>
    %173 = arith.mulf %171, %172 : vector<8x128xf32>
    %174 = vector.broadcast %20 : vector<1x128xf32> to vector<8x128xf32>
    %175 = arith.addf %173, %174 : vector<8x128xf32>
    %cst_78 = arith.constant 0.000000e+00 : f32
    %176 = vector.broadcast %cst_78 : f32 to vector<8x128xf32>
    %177 = arith.maximumf %175, %176 : vector<8x128xf32>
    %c152 = arith.constant 152 : index
    %c0_79 = arith.constant 0 : index
    %178 = vector.load %arg6[%c152, %c0_79] : memref<256x128xf32, #tpu.memory_space<vmem>>, vector<8x128xf32>
    %179 = vector.broadcast %19 : vector<1x128xf32> to vector<8x128xf32>
    %180 = arith.mulf %178, %179 : vector<8x128xf32>
    %181 = vector.broadcast %20 : vector<1x128xf32> to vector<8x128xf32>
    %182 = arith.addf %180, %181 : vector<8x128xf32>
    %cst_80 = arith.constant 0.000000e+00 : f32
    %183 = vector.broadcast %cst_80 : f32 to vector<8x128xf32>
    %184 = arith.maximumf %182, %183 : vector<8x128xf32>
    %185 = arith.maximumf %163, %170 : vector<8x128xf32>
    %186 = arith.maximumf %177, %184 : vector<8x128xf32>
    %187 = arith.maximumf %185, %186 : vector<8x128xf32>
    %c0_81 = arith.constant 0 : index
    %c32_82 = arith.constant 32 : index
    %c0_83 = arith.constant 0 : index
    %188 = vector.load %arg5[%c0_81, %c32_82, %c0_83] : memref<1x64x128xf32, #tpu.memory_space<vmem>>, vector<1x8x128xf32>
    %189 = vector.shape_cast %188 : vector<1x8x128xf32> to vector<8x128xf32>
    %190 = vector.shape_cast %187 : vector<8x128xf32> to vector<1x8x128xf32>
    tpu.vector_store %arg5[%c0_81, %c32_82, %c0_83], %190 {strides = array<i32>} : memref<1x64x128xf32, #tpu.memory_space<vmem>>, vector<1x8x128xf32>,
    %c160 = arith.constant 160 : index
    %c0_84 = arith.constant 0 : index
    %191 = vector.load %arg6[%c160, %c0_84] : memref<256x128xf32, #tpu.memory_space<vmem>>, vector<8x128xf32>
    %192 = vector.broadcast %19 : vector<1x128xf32> to vector<8x128xf32>
    %193 = arith.mulf %191, %192 : vector<8x128xf32>
    %194 = vector.broadcast %20 : vector<1x128xf32> to vector<8x128xf32>
    %195 = arith.addf %193, %194 : vector<8x128xf32>
    %cst_85 = arith.constant 0.000000e+00 : f32
    %196 = vector.broadcast %cst_85 : f32 to vector<8x128xf32>
    %197 = arith.maximumf %195, %196 : vector<8x128xf32>
    %c168 = arith.constant 168 : index
    %c0_86 = arith.constant 0 : index
    %198 = vector.load %arg6[%c168, %c0_86] : memref<256x128xf32, #tpu.memory_space<vmem>>, vector<8x128xf32>
    %199 = vector.broadcast %19 : vector<1x128xf32> to vector<8x128xf32>
    %200 = arith.mulf %198, %199 : vector<8x128xf32>
    %201 = vector.broadcast %20 : vector<1x128xf32> to vector<8x128xf32>
    %202 = arith.addf %200, %201 : vector<8x128xf32>
    %cst_87 = arith.constant 0.000000e+00 : f32
    %203 = vector.broadcast %cst_87 : f32 to vector<8x128xf32>
    %204 = arith.maximumf %202, %203 : vector<8x128xf32>
    %c176 = arith.constant 176 : index
    %c0_88 = arith.constant 0 : index
    %205 = vector.load %arg6[%c176, %c0_88] : memref<256x128xf32, #tpu.memory_space<vmem>>, vector<8x128xf32>
    %206 = vector.broadcast %19 : vector<1x128xf32> to vector<8x128xf32>
    %207 = arith.mulf %205, %206 : vector<8x128xf32>
    %208 = vector.broadcast %20 : vector<1x128xf32> to vector<8x128xf32>
    %209 = arith.addf %207, %208 : vector<8x128xf32>
    %cst_89 = arith.constant 0.000000e+00 : f32
    %210 = vector.broadcast %cst_89 : f32 to vector<8x128xf32>
    %211 = arith.maximumf %209, %210 : vector<8x128xf32>
    %c184 = arith.constant 184 : index
    %c0_90 = arith.constant 0 : index
    %212 = vector.load %arg6[%c184, %c0_90] : memref<256x128xf32, #tpu.memory_space<vmem>>, vector<8x128xf32>
    %213 = vector.broadcast %19 : vector<1x128xf32> to vector<8x128xf32>
    %214 = arith.mulf %212, %213 : vector<8x128xf32>
    %215 = vector.broadcast %20 : vector<1x128xf32> to vector<8x128xf32>
    %216 = arith.addf %214, %215 : vector<8x128xf32>
    %cst_91 = arith.constant 0.000000e+00 : f32
    %217 = vector.broadcast %cst_91 : f32 to vector<8x128xf32>
    %218 = arith.maximumf %216, %217 : vector<8x128xf32>
    %219 = arith.maximumf %197, %204 : vector<8x128xf32>
    %220 = arith.maximumf %211, %218 : vector<8x128xf32>
    %221 = arith.maximumf %219, %220 : vector<8x128xf32>
    %c0_92 = arith.constant 0 : index
    %c40_93 = arith.constant 40 : index
    %c0_94 = arith.constant 0 : index
    %222 = vector.load %arg5[%c0_92, %c40_93, %c0_94] : memref<1x64x128xf32, #tpu.memory_space<vmem>>, vector<1x8x128xf32>
    %223 = vector.shape_cast %222 : vector<1x8x128xf32> to vector<8x128xf32>
    %224 = vector.shape_cast %221 : vector<8x128xf32> to vector<1x8x128xf32>
    tpu.vector_store %arg5[%c0_92, %c40_93, %c0_94], %224 {strides = array<i32>} : memref<1x64x128xf32, #tpu.memory_space<vmem>>, vector<1x8x128xf32>,
    %c192 = arith.constant 192 : index
    %c0_95 = arith.constant 0 : index
    %225 = vector.load %arg6[%c192, %c0_95] : memref<256x128xf32, #tpu.memory_space<vmem>>, vector<8x128xf32>
    %226 = vector.broadcast %19 : vector<1x128xf32> to vector<8x128xf32>
    %227 = arith.mulf %225, %226 : vector<8x128xf32>
    %228 = vector.broadcast %20 : vector<1x128xf32> to vector<8x128xf32>
    %229 = arith.addf %227, %228 : vector<8x128xf32>
    %cst_96 = arith.constant 0.000000e+00 : f32
    %230 = vector.broadcast %cst_96 : f32 to vector<8x128xf32>
    %231 = arith.maximumf %229, %230 : vector<8x128xf32>
    %c200 = arith.constant 200 : index
    %c0_97 = arith.constant 0 : index
    %232 = vector.load %arg6[%c200, %c0_97] : memref<256x128xf32, #tpu.memory_space<vmem>>, vector<8x128xf32>
    %233 = vector.broadcast %19 : vector<1x128xf32> to vector<8x128xf32>
    %234 = arith.mulf %232, %233 : vector<8x128xf32>
    %235 = vector.broadcast %20 : vector<1x128xf32> to vector<8x128xf32>
    %236 = arith.addf %234, %235 : vector<8x128xf32>
    %cst_98 = arith.constant 0.000000e+00 : f32
    %237 = vector.broadcast %cst_98 : f32 to vector<8x128xf32>
    %238 = arith.maximumf %236, %237 : vector<8x128xf32>
    %c208 = arith.constant 208 : index
    %c0_99 = arith.constant 0 : index
    %239 = vector.load %arg6[%c208, %c0_99] : memref<256x128xf32, #tpu.memory_space<vmem>>, vector<8x128xf32>
    %240 = vector.broadcast %19 : vector<1x128xf32> to vector<8x128xf32>
    %241 = arith.mulf %239, %240 : vector<8x128xf32>
    %242 = vector.broadcast %20 : vector<1x128xf32> to vector<8x128xf32>
    %243 = arith.addf %241, %242 : vector<8x128xf32>
    %cst_100 = arith.constant 0.000000e+00 : f32
    %244 = vector.broadcast %cst_100 : f32 to vector<8x128xf32>
    %245 = arith.maximumf %243, %244 : vector<8x128xf32>
    %c216 = arith.constant 216 : index
    %c0_101 = arith.constant 0 : index
    %246 = vector.load %arg6[%c216, %c0_101] : memref<256x128xf32, #tpu.memory_space<vmem>>, vector<8x128xf32>
    %247 = vector.broadcast %19 : vector<1x128xf32> to vector<8x128xf32>
    %248 = arith.mulf %246, %247 : vector<8x128xf32>
    %249 = vector.broadcast %20 : vector<1x128xf32> to vector<8x128xf32>
    %250 = arith.addf %248, %249 : vector<8x128xf32>
    %cst_102 = arith.constant 0.000000e+00 : f32
    %251 = vector.broadcast %cst_102 : f32 to vector<8x128xf32>
    %252 = arith.maximumf %250, %251 : vector<8x128xf32>
    %253 = arith.maximumf %231, %238 : vector<8x128xf32>
    %254 = arith.maximumf %245, %252 : vector<8x128xf32>
    %255 = arith.maximumf %253, %254 : vector<8x128xf32>
    %c0_103 = arith.constant 0 : index
    %c48_104 = arith.constant 48 : index
    %c0_105 = arith.constant 0 : index
    %256 = vector.load %arg5[%c0_103, %c48_104, %c0_105] : memref<1x64x128xf32, #tpu.memory_space<vmem>>, vector<1x8x128xf32>
    %257 = vector.shape_cast %256 : vector<1x8x128xf32> to vector<8x128xf32>
    %258 = vector.shape_cast %255 : vector<8x128xf32> to vector<1x8x128xf32>
    tpu.vector_store %arg5[%c0_103, %c48_104, %c0_105], %258 {strides = array<i32>} : memref<1x64x128xf32, #tpu.memory_space<vmem>>, vector<1x8x128xf32>,
    %c224 = arith.constant 224 : index
    %c0_106 = arith.constant 0 : index
    %259 = vector.load %arg6[%c224, %c0_106] : memref<256x128xf32, #tpu.memory_space<vmem>>, vector<8x128xf32>
    %260 = vector.broadcast %19 : vector<1x128xf32> to vector<8x128xf32>
    %261 = arith.mulf %259, %260 : vector<8x128xf32>
    %262 = vector.broadcast %20 : vector<1x128xf32> to vector<8x128xf32>
    %263 = arith.addf %261, %262 : vector<8x128xf32>
    %cst_107 = arith.constant 0.000000e+00 : f32
    %264 = vector.broadcast %cst_107 : f32 to vector<8x128xf32>
    %265 = arith.maximumf %263, %264 : vector<8x128xf32>
    %c232 = arith.constant 232 : index
    %c0_108 = arith.constant 0 : index
    %266 = vector.load %arg6[%c232, %c0_108] : memref<256x128xf32, #tpu.memory_space<vmem>>, vector<8x128xf32>
    %267 = vector.broadcast %19 : vector<1x128xf32> to vector<8x128xf32>
    %268 = arith.mulf %266, %267 : vector<8x128xf32>
    %269 = vector.broadcast %20 : vector<1x128xf32> to vector<8x128xf32>
    %270 = arith.addf %268, %269 : vector<8x128xf32>
    %cst_109 = arith.constant 0.000000e+00 : f32
    %271 = vector.broadcast %cst_109 : f32 to vector<8x128xf32>
    %272 = arith.maximumf %270, %271 : vector<8x128xf32>
    %c240 = arith.constant 240 : index
    %c0_110 = arith.constant 0 : index
    %273 = vector.load %arg6[%c240, %c0_110] : memref<256x128xf32, #tpu.memory_space<vmem>>, vector<8x128xf32>
    %274 = vector.broadcast %19 : vector<1x128xf32> to vector<8x128xf32>
    %275 = arith.mulf %273, %274 : vector<8x128xf32>
    %276 = vector.broadcast %20 : vector<1x128xf32> to vector<8x128xf32>
    %277 = arith.addf %275, %276 : vector<8x128xf32>
    %cst_111 = arith.constant 0.000000e+00 : f32
    %278 = vector.broadcast %cst_111 : f32 to vector<8x128xf32>
    %279 = arith.maximumf %277, %278 : vector<8x128xf32>
    %c248 = arith.constant 248 : index
    %c0_112 = arith.constant 0 : index
    %280 = vector.load %arg6[%c248, %c0_112] : memref<256x128xf32, #tpu.memory_space<vmem>>, vector<8x128xf32>
    %281 = vector.broadcast %19 : vector<1x128xf32> to vector<8x128xf32>
    %282 = arith.mulf %280, %281 : vector<8x128xf32>
    %283 = vector.broadcast %20 : vector<1x128xf32> to vector<8x128xf32>
    %284 = arith.addf %282, %283 : vector<8x128xf32>
    %cst_113 = arith.constant 0.000000e+00 : f32
    %285 = vector.broadcast %cst_113 : f32 to vector<8x128xf32>
    %286 = arith.maximumf %284, %285 : vector<8x128xf32>
    %287 = arith.maximumf %265, %272 : vector<8x128xf32>
    %288 = arith.maximumf %279, %286 : vector<8x128xf32>
    %289 = arith.maximumf %287, %288 : vector<8x128xf32>
    %c0_114 = arith.constant 0 : index
    %c56_115 = arith.constant 56 : index
    %c0_116 = arith.constant 0 : index
    %290 = vector.load %arg5[%c0_114, %c56_115, %c0_116] : memref<1x64x128xf32, #tpu.memory_space<vmem>>, vector<1x8x128xf32>
    %291 = vector.shape_cast %290 : vector<1x8x128xf32> to vector<8x128xf32>
    %292 = vector.shape_cast %289 : vector<8x128xf32> to vector<1x8x128xf32>
    tpu.vector_store %arg5[%c0_114, %c56_115, %c0_116], %292 {strides = array<i32>} : memref<1x64x128xf32, #tpu.memory_space<vmem>>, vector<1x8x128xf32>,
    return
  }
  func.func @transform_0(%arg0: i32) -> (i32, i32) {
    %c0_i32 = arith.constant 0 : i32
    %c0_i32_0 = arith.constant 0 : i32
    %c0_i32_1 = arith.constant 0 : i32
    return %c0_i32, %c0_i32_0 : i32, i32
  }
  func.func @transform_1(%arg0: i32) -> (i32, i32) {
    %c0_i32 = arith.constant 0 : i32
    %c0_i32_0 = arith.constant 0 : i32
    %c0_i32_1 = arith.constant 0 : i32
    return %c0_i32, %c0_i32_0 : i32, i32
  }
  func.func @transform_2(%arg0: i32) -> (i32, i32) {
    %c0_i32 = arith.constant 0 : i32
    %c0_i32_0 = arith.constant 0 : i32
    return %arg0, %c0_i32 : i32, i32
  }
  func.func @transform_3(%arg0: i32) -> (i32, i32, i32) {
    %c0_i32 = arith.constant 0 : i32
    %c0_i32_0 = arith.constant 0 : i32
    %c0_i32_1 = arith.constant 0 : i32
    %c0_i32_2 = arith.constant 0 : i32
    return %c0_i32, %c0_i32_0, %c0_i32_1 : i32, i32, i32
  }
  func.func @transform_4(%arg0: i32) -> (i32, i32, i32) {
    %c0_i32 = arith.constant 0 : i32
    %c0_i32_0 = arith.constant 0 : i32
    %c0_i32_1 = arith.constant 0 : i32
    return %arg0, %c0_i32, %c0_i32_0 : i32, i32, i32
  }
}

</mosaic_0001>

<bundles_post_ra>
// kernel: conv_block_forward.2
= control target key start
LH: loop header
LB: loop body
LE: loop exit
PB: predicated region body
PF: predicated region fallthrough
CT: control target
= control target key end

     0   :  { %s2034_s9 = smov 0   ;;  %s2036_s10 = smov 0   ;;  %s2190_s0 = inlined_call_operand.vmem [shape: bf16[576,16], index: 0, kind: input, shape index: {}]   ;;  %s2191_s1 = inlined_call_operand.vmem [shape: bf16[3,16,128], index: 1, kind: input, shape index: {}]   ;;  %s2192_s2 = inlined_call_operand.vmem [shape: f32[2,256], index: 2, kind: output, shape index: {}]  }
   0x1   :  { %s2038_s11 = smov 0  }
   0x2 LB: > { %s24_s12 = sadd.s32 1, %s2012_s10  ;;  %p1591_p0 = scmp.ge.s32.totalorder %s2016_s11, 1  ;;  %s2016_s11 = sphi %s2038_s11, %s12_s11   ;;  %s2012_s10 = sphi %s2036_s10, %s2194_s10   ;;  %s2008_s9 = sphi %s2034_s9, %s2193_s9  }
   0x3   : > { %p26_p1 = scmp.ge.s32.totalorder %s24_s12, 2  ;;  %p129_p2 = scmp.lt.s32.totalorder %s2016_s11, 3 }
   0x5   : > { %s2196_s12 = smov (%p26_p1, %s24_s12), 0  ;;  %p130_p3 = pnand %p1591_p0, %p129_p2 }
   0x6   : > { %v1943_v0 = vld [vmem:[%s2191_s1] sm:$0xff] (!%p130_p3)   ;;  %s152_s15 = smul.u32 (!%p130_p3), 36, %s2008_s9  ;;  %v1944_v1 = vld [vmem:[%s2191_s1 + $0x8] sm:$0xff] (!%p130_p3)   ;;  %v1947_v2 = vld [vmem:[%s2191_s1 + $0x10] sm:$0xff] (!%p130_p3)   ;;  %vm289_vm0 = vcmask (!%p130_p3), 130048   ;;  %p159_p5 = scmp.lt.s32.totalorder (!%p130_p3), %s2008_s9, 1 }
   0x7   : > { %133 = sbr.rel (%p130_p3) target bundleno = 348 (0x15c), region = 28  ;;  %1750 = vmatprep.subr.bf16.mxu1 (!%p130_p3), %v1943_v0  ;;  %1784 = vmatprep.subr.bf16.mxu0 (!%p130_p3), %v1944_v1  ;;  %v2018_v51 = vmov (!%p130_p3), 0.0   ;;  %vm1522_vm1 = vcmask (!%p130_p3), 1040384  }
   0x8   : > { %p153_p4 = scmp.lt.s32.totalorder (!%p130_p3), %s152_s15, 71  ;;  %1751 = vmatpush3.bf16.msra.mxu1 (!%p130_p3), %v1943_v0  ;;  %1785 = vmatpush3.bf16.msra.mxu0 (!%p130_p3), %v1944_v1 }
   0x9   : > { %1852 = vmatprep.subr.bf16.mxu1 (!%p130_p3), %v1944_v1  ;;  %1818 = vmatprep.subr.bf16.mxu0 (!%p130_p3), %v1947_v2 }
   0xe   : > { %s2198_s15 = smov (!%p153_p4, %s152_s15), 71  ;;  %s2200_s9 = smov (!%p159_p5, %s2008_s9), 1 }
   0xf   : > { %s1592_s20 = sshll.u32 %s2198_s15, 2  ;;  %s1593_s24 = sshll.u32 %s2200_s9, 1 }
  0x10   : > { %s2067_s23 = scalar_lea.vmem %s2190_s0, %s1592_s20  ;;  %s2170_s27 = scalar_lea.vmem %s2192_s2, %s1593_s24 }
  0x11   : > { %v1945_v3 = vld [vmem:[%s2067_s23] sm:$0xff]   ;;  %v1946_v4 = vld [vmem:[%s2067_s23 + $0x8] sm:$0xff]   ;;  %v1949_v6 = vld [vmem:[%s2067_s23 + $0x10] sm:$0xff]   ;;  %168 = vst [vmem:[%s2170_s27] sm:$0x3] %v2018_v51 }
  0x12   : > { %1752 = vmatprep.mubr.msk.bf16.mxu1 %vm289_vm0, %v1945_v3  ;;  %v1948_v5 = vld [vmem:[%s2067_s23 + $0x8] sm:$0xff]   ;;  %1786 = vmatprep.mubr.msk.bf16.mxu0 %vm289_vm0, %v1946_v4  ;;  %v1950_v7 = vld [vmem:[%s2067_s23 + $0x10] sm:$0xff]   ;;  %v1951_v8 = vld [vmem:[%s2067_s23 + $0x18] sm:$0xff]  }
  0x13   : > { %1753 = vmatmul.mubr.msk.bf16.vlgmr.msra.gmra.mrb[0].mxu1 %vm289_vm0, %v1948_v5  ;;  %1787 = vmatmul.mubr.msk.bf16.vlgmr.msra.gmra.mrb[0].mxu0 %vm289_vm0, %v1949_v6  ;;  %v1952_v9 = vld [vmem:[%s2067_s23 + $0x18] sm:$0xff]   ;;  %v1953_v10 = vld [vmem:[%s2067_s23 + $0x20] sm:$0xff]   ;;  %v1955_v12 = vld [vmem:[%s2067_s23 + $0x28] sm:$0xff]  }
  0x14   : > { %1853 = vmatpush3.bf16.msra.mxu1 %v1944_v1  ;;  %1819 = vmatpush3.bf16.msra.mxu0 %v1947_v2  ;;  %v1954_v11 = vld [vmem:[%s2067_s23 + $0x20] sm:$0xff]   ;;  %v1956_v13 = vld [vmem:[%s2067_s23 + $0x28] sm:$0xff]   ;;  %v1957_v14 = vld [vmem:[%s2067_s23 + $0x30] sm:$0xff]  }
  0x15   : > { %1756 = vmatprep.mubr.msk.bf16.mxu1 %vm289_vm0, %v1950_v7  ;;  %1790 = vmatprep.mubr.msk.bf16.mxu0 %vm289_vm0, %v1951_v8  ;;  %v1958_v15 = vld [vmem:[%s2067_s23 + $0x30] sm:$0xff]   ;;  %v1959_v16 = vld [vmem:[%s2067_s23 + $0x38] sm:$0xff]   ;;  %v1961_v18 = vld [vmem:[%s2067_s23 + $0x40] sm:$0xff]  }
  0x16   : > { %v1960_v17 = vld [vmem:[%s2067_s23 + $0x38] sm:$0xff]   ;;  %v1962_v19 = vld [vmem:[%s2067_s23 + $0x40] sm:$0xff]   ;;  %v1963_v20 = vld [vmem:[%s2067_s23 + $0x10] sm:$0xff]  }
  0x17   : > { %v1964_v21 = vld [vmem:[%s2067_s23 + $0x48] sm:$0xff]   ;;  %v1965_v22 = vld [vmem:[%s2067_s23 + $0x18] sm:$0xff]   ;;  %v1966_v23 = vld [vmem:[%s2067_s23 + $0x50] sm:$0xff]  }
  0x18   : > { %v1967_v24 = vld [vmem:[%s2067_s23 + $0x20] sm:$0xff]   ;;  %v1968_v25 = vld [vmem:[%s2067_s23 + $0x58] sm:$0xff]   ;;  %v1969_v26 = vld [vmem:[%s2067_s23 + $0x28] sm:$0xff]  }
  0x19   : > { %v1970_v27 = vld [vmem:[%s2067_s23 + $0x60] sm:$0xff]   ;;  %v1971_v28 = vld [vmem:[%s2067_s23 + $0x30] sm:$0xff]   ;;  %v1972_v29 = vld [vmem:[%s2067_s23 + $0x68] sm:$0xff]  }
  0x1a   : > { %v1973_v30 = vld [vmem:[%s2067_s23 + $0x38] sm:$0xff]   ;;  %v1974_v31 = vld [vmem:[%s2067_s23 + $0x70] sm:$0xff]   ;;  %v1975_v32 = vld [vmem:[%s2067_s23 + $0x40] sm:$0xff]  }
  0x1b   : > { %1757 = vmatmul.mubr.msk.bf16.gmra.mrb[4].mxu1 %vm289_vm0, %v1952_v9  ;;  %1791 = vmatmul.mubr.msk.bf16.gmra.mrb[4].mxu0 %vm289_vm0, %v1953_v10  ;;  %v1976_v33 = vld [vmem:[%s2067_s23 + $0x78] sm:$0xff]   ;;  %v1977_v34 = vld [vmem:[%s2067_s23 + $0x48] sm:$0xff]   ;;  %v1979_v36 = vld [vmem:[%s2067_s23 + $0x50] sm:$0xff]  }
  0x1c   : > { %1760 = vmatprep.mubr.msk.bf16.mxu1 %vm289_vm0, %v1954_v11  ;;  %1794 = vmatprep.mubr.msk.bf16.mxu0 %vm289_vm0, %v1955_v12  ;;  %v1978_v35 = vld [vmem:[%s2067_s23 + $0x48] sm:$0xff]   ;;  %v1980_v37 = vld [vmem:[%s2067_s23 + $0x50] sm:$0xff]   ;;  %v1981_v38 = vld [vmem:[%s2067_s23 + $0x58] sm:$0xff]  }
  0x1d   : > { %v1982_v39 = vld [vmem:[%s2067_s23 + $0x58] sm:$0xff]   ;;  %v1983_v40 = vld [vmem:[%s2067_s23 + $0x60] sm:$0xff]   ;;  %v1985_v42 = vld [vmem:[%s2067_s23 + $0x68] sm:$0xff]  }
  0x1e   : > { %v1984_v41 = vld [vmem:[%s2067_s23 + $0x60] sm:$0xff]   ;;  %v1986_v43 = vld [vmem:[%s2067_s23 + $0x68] sm:$0xff]   ;;  %v1987_v44 = vld [vmem:[%s2067_s23 + $0x70] sm:$0xff]  }
  0x1f   : > { %v1988_v45 = vld [vmem:[%s2067_s23 + $0x70] sm:$0xff]   ;;  %v1989_v46 = vld [vmem:[%s2067_s23 + $0x78] sm:$0xff]   ;;  %v1991_v48 = vld [vmem:[%s2067_s23 + $0x80] sm:$0xff]  }
  0x20   : > { %v1990_v47 = vld [vmem:[%s2067_s23 + $0x78] sm:$0xff]   ;;  %v1992_v49 = vld [vmem:[%s2067_s23 + $0x80] sm:$0xff]   ;;  %v1993_v50 = vld [vmem:[%s2067_s23 + $0x88] sm:$0xff]  }
  0x23   : > { %1761 = vmatmul.mubr.msk.bf16.gmra.mrb[8].mxu1 %vm289_vm0, %v1956_v13  ;;  %1795 = vmatmul.mubr.msk.bf16.gmra.mrb[8].mxu0 %vm289_vm0, %v1957_v14 }
  0x24   : > { %1764 = vmatprep.mubr.msk.bf16.mxu1 %vm289_vm0, %v1958_v15  ;;  %1798 = vmatprep.mubr.msk.bf16.mxu0 %vm289_vm0, %v1959_v16 }
  0x2b   : > { %1765 = vmatmul.mubr.msk.bf16.gmra.mrb[12].mxu1 %vm289_vm0, %v1960_v17  ;;  %1799 = vmatmul.mubr.msk.bf16.gmra.mrb[12].mxu0 %vm289_vm0, %v1961_v18 }
  0x2c   : > { %1768 = vmatprep.mubr.msk.bf16.mxu1 %vm289_vm0, %v1962_v19  ;;  %1820 = vmatprep.mubr.msk.bf16.mxu0 %vm289_vm0, %v1963_v20 }
  0x33   : > { %1769 = vmatmul.mubr.msk.bf16.gmra.mrb[16].mxu1 %vm289_vm0, %v1964_v21  ;;  %1821 = vmatmul.mubr.msk.bf16.vlgmr.msra.gmra.mrb[0].mxu0 %vm289_vm0, %v1965_v22 }
  0x34   : > { %1772 = vmatprep.mubr.msk.bf16.mxu1 %vm289_vm0, %v1966_v23  ;;  %1824 = vmatprep.mubr.msk.bf16.mxu0 %vm289_vm0, %v1967_v24 }
  0x3b   : > { %1773 = vmatmul.mubr.msk.bf16.gmra.mrb[20].mxu1 %vm289_vm0, %v1968_v25  ;;  %1825 = vmatmul.mubr.msk.bf16.gmra.mrb[4].mxu0 %vm289_vm0, %v1969_v26 }
  0x3c   : > { %1776 = vmatprep.mubr.msk.bf16.mxu1 %vm289_vm0, %v1970_v27  ;;  %1828 = vmatprep.mubr.msk.bf16.mxu0 %vm289_vm0, %v1971_v28 }
  0x43   : > { %1777 = vmatmul.mubr.msk.bf16.gmra.mrb[24].mxu1 %vm289_vm0, %v1972_v29  ;;  %1829 = vmatmul.mubr.msk.bf16.gmra.mrb[8].mxu0 %vm289_vm0, %v1973_v30 }
  0x44   : > { %1780 = vmatprep.mubr.msk.bf16.mxu1 %vm289_vm0, %v1974_v31  ;;  %1832 = vmatprep.mubr.msk.bf16.mxu0 %vm289_vm0, %v1975_v32 }
  0x4b   : > { %1781 = vmatmul.mubr.msk.bf16.gmra.mrb[28].mxu1 %vm289_vm0, %v1976_v33  ;;  %1833 = vmatmul.mubr.msk.bf16.gmra.mrb[12].mxu0 %vm289_vm0, %v1977_v34 }
  0x4c   : > { %1802 = vmatprep.mubr.msk.bf16.mxu1 %vm289_vm0, %v1978_v35  ;;  %1836 = vmatprep.mubr.msk.bf16.mxu0 %vm289_vm0, %v1979_v36 }
  0x53   : > { %1803 = vmatmul.mubr.msk.bf16.vlgmr.msra.gmra.mrb[16].mxu1 %vm289_vm0, %v1980_v37  ;;  %1837 = vmatmul.mubr.msk.bf16.gmra.mrb[16].mxu0 %vm289_vm0, %v1981_v38 }
  0x54   : > { %1806 = vmatprep.mubr.msk.bf16.mxu1 %vm289_vm0, %v1982_v39  ;;  %1840 = vmatprep.mubr.msk.bf16.mxu0 %vm289_vm0, %v1983_v40 }
  0x5b   : > { %1807 = vmatmul.mubr.msk.bf16.gmra.mrb[20].mxu1 %vm289_vm0, %v1984_v41  ;;  %1841 = vmatmul.mubr.msk.bf16.gmra.mrb[20].mxu0 %vm289_vm0, %v1985_v42 }
  0x5c   : > { %1810 = vmatprep.mubr.msk.bf16.mxu1 %vm289_vm0, %v1986_v43  ;;  %1844 = vmatprep.mubr.msk.bf16.mxu0 %vm289_vm0, %v1987_v44 }
  0x63   : > { %1811 = vmatmul.mubr.msk.bf16.gmra.mrb[24].mxu1 %vm289_vm0, %v1988_v45  ;;  %1845 = vmatmul.mubr.msk.bf16.gmra.mrb[24].mxu0 %vm289_vm0, %v1989_v46 }
  0x64   : > { %1814 = vmatprep.mubr.msk.bf16.mxu1 %vm289_vm0, %v1990_v47  ;;  %1848 = vmatprep.mubr.msk.bf16.mxu0 %vm289_vm0, %v1991_v48 }
  0x6b   : > { %1815 = vmatmul.mubr.msk.bf16.gmra.mrb[28].mxu1 %vm289_vm0, %v1992_v49  ;;  %1849 = vmatmul.mubr.msk.bf16.gmra.mrb[28].mxu0 %vm289_vm0, %v1993_v50 }
  0xe6   : > { %v1754_v52 = vpop.f32.mrb[0].mxu1 }
  0xe7   : > { %v372_v53 = vpop.f32.mrb[1].mxu1 }
  0xe8   : > { %v1755_v54 = vpop.f32.mrb[2].mxu1 }
  0xe9   : > { %v375_v55 = vpop.f32.mrb[3].mxu1 }
  0xee   : > { %v1758_v56 = vpop.f32.mrb[4].mxu1 }
  0xef   : > { %v388_v57 = vpop.f32.mrb[5].mxu1 }
  0xf0   : > { %v1759_v58 = vpop.f32.mrb[6].mxu1 }
  0xf1   : > { %v391_v59 = vpop.f32.mrb[7].mxu1 }
  0xf6   : > { %v1762_v60 = vpop.f32.mrb[8].mxu1 }
  0xf7   : > { %v404_v61 = vpop.f32.mrb[9].mxu1 }
  0xf8   : > { %v1763_v62 = vpop.f32.mrb[10].mxu1 }
  0xf9   : > { %v407_v63 = vpop.f32.mrb[11].mxu1 }
  0xfe   : > { %v1766_v0 = vpop.f32.mrb[12].mxu1 }
  0xff   : > { %v420_v1 = vpop.f32.mrb[13].mxu1 }
 0x100   : > { %v2173_v2 = vpop.f32.mrb[14].mxu1 }
 0x101   : > { %v2175_v3 = vpop.f32.mrb[15].mxu1 }
 0x106   : > { %v1822_v4 = vpop.f32.mrb[0].mxu0 }
 0x107   : > { %v1854_v5 = vadd.f32 %v1822_v4, %v1754_v52  ;;  %v1192_v6 = vpop.f32.mrb[1].mxu0 }
 0x108   : > { %v1855_v7 = vadd.f32 %v1192_v6, %v372_v53  ;;  %v1823_v8 = vpop.f32.mrb[2].mxu0 }
 0x109   : > { %v1856_v9 = vadd.f32 %v1823_v8, %v1755_v54  ;;  %v1195_v10 = vpop.f32.mrb[3].mxu0  ;;  %v1454_v15 = vmul.f32 %v1854_v5, %v1854_v5 }
 0x10a   : > { %v1857_v11 = vadd.f32 %v1195_v10, %v375_v55  ;;  %v1452_v12 = vmul.f32 %v1855_v7, %v1855_v7 }
 0x10b   : > { %v1455_v21 = vmul.f32 %v1856_v9, %v1856_v9 }
 0x10c   : > { %v1415_v13 = vadd.f32 %v1857_v11, %v1855_v7  ;;  %v1453_v14 = vmul.f32 %v1857_v11, %v1857_v11 }
 0x10e   : > { %v1416_v16 = vadd.f32 %v1854_v5, %v1415_v13  ;;  %v1484_v17 = vadd.f32 %v1453_v14, %v1452_v12  ;;  %v1826_v18 = vpop.f32.mrb[4].mxu0 }
 0x10f   : > { %v1858_v19 = vadd.f32 %v1826_v18, %v1758_v56  ;;  %v1208_v20 = vpop.f32.mrb[5].mxu0 }
 0x110   : > { %v1485_v22 = vadd.f32 %v1484_v17, %v1454_v15  ;;  %v1859_v23 = vadd.f32 %v1208_v20, %v388_v57  ;;  %v1417_v24 = vadd.f32 %v1856_v9, %v1416_v16  ;;  %v1827_v25 = vpop.f32.mrb[6].mxu0 }
 0x111   : > { %v1860_v26 = vadd.f32 %v1827_v25, %v1759_v58  ;;  %v1211_v27 = vpop.f32.mrb[7].mxu0  ;;  %v1458_v35 = vmul.f32 %v1858_v19, %v1858_v19 }
 0x112   : > { %v1418_v28 = vadd.f32 %v1859_v23, %v1417_v24  ;;  %v1456_v29 = vmul.f32 %v1859_v23, %v1859_v23  ;;  %v1486_v30 = vadd.f32 %v1485_v22, %v1455_v21  ;;  %v1861_v31 = vadd.f32 %v1211_v27, %v391_v59 }
 0x113   : > { %v1459_v41 = vmul.f32 %v1860_v26, %v1860_v26 }
 0x114   : > { %v1487_v32 = vadd.f32 %v1486_v30, %v1456_v29  ;;  %v1419_v33 = vadd.f32 %v1861_v31, %v1418_v28  ;;  %v1457_v34 = vmul.f32 %v1861_v31, %v1861_v31 }
 0x116   : > { %v1420_v36 = vadd.f32 %v1858_v19, %v1419_v33  ;;  %v1488_v37 = vadd.f32 %v1487_v32, %v1457_v34  ;;  %v1830_v38 = vpop.f32.mrb[8].mxu0 }
 0x117   : > { %v1862_v39 = vadd.f32 %v1830_v38, %v1762_v60  ;;  %v1224_v40 = vpop.f32.mrb[9].mxu0 }
 0x118   : > { %v1489_v42 = vadd.f32 %v1488_v37, %v1458_v35  ;;  %v1863_v43 = vadd.f32 %v1224_v40, %v404_v61  ;;  %v1421_v44 = vadd.f32 %v1860_v26, %v1420_v36  ;;  %v1831_v45 = vpop.f32.mrb[10].mxu0 }
 0x119   : > { %v1864_v46 = vadd.f32 %v1831_v45, %v1763_v62  ;;  %v1227_v47 = vpop.f32.mrb[11].mxu0  ;;  %v1462_v55 = vmul.f32 %v1862_v39, %v1862_v39 }
 0x11a   : > { %v1422_v48 = vadd.f32 %v1863_v43, %v1421_v44  ;;  %v1460_v49 = vmul.f32 %v1863_v43, %v1863_v43  ;;  %v1490_v50 = vadd.f32 %v1489_v42, %v1459_v41  ;;  %v1865_v51 = vadd.f32 %v1227_v47, %v407_v63 }
 0x11b   : > { %v1463_v4 = vmul.f32 %v1864_v46, %v1864_v46 }
 0x11c   : > { %v1491_v52 = vadd.f32 %v1490_v50, %v1460_v49  ;;  %v1423_v53 = vadd.f32 %v1865_v51, %v1422_v48  ;;  %v1461_v54 = vmul.f32 %v1865_v51, %v1865_v51 }
 0x11e   : > { %v1424_v56 = vadd.f32 %v1862_v39, %v1423_v53  ;;  %v1492_v57 = vadd.f32 %v1491_v52, %v1461_v54  ;;  %v1834_v58 = vpop.f32.mrb[12].mxu0 }
 0x11f   : > { %v1866_v59 = vadd.f32 %v1834_v58, %v1766_v0  ;;  %v1240_v60 = vpop.f32.mrb[13].mxu0 }
 0x120   : > { %v1493_v5 = vadd.f32 %v1492_v57, %v1462_v55  ;;  %v1867_v61 = vadd.f32 %v1240_v60, %v420_v1  ;;  %v1425_v6 = vadd.f32 %v1864_v46, %v1424_v56  ;;  %v1835_v7 = vpop.f32.mrb[14].mxu0 }
 0x121   : > { %v1868_v62 = vadd.f32 %v1835_v7, %v2173_v2  ;;  %v1243_v8 = vpop.f32.mrb[15].mxu0  ;;  %v1466_v16 = vmul.f32 %v1866_v59, %v1866_v59 }
 0x122   : > { %v1426_v9 = vadd.f32 %v1867_v61, %v1425_v6  ;;  %v1464_v10 = vmul.f32 %v1867_v61, %v1867_v61  ;;  %v1494_v63 = vadd.f32 %v1493_v5, %v1463_v4  ;;  %v1869_v11 = vadd.f32 %v1243_v8, %v2175_v3 }
 0x123   : > { %v1467_v22 = vmul.f32 %v1868_v62, %v1868_v62 }
 0x124   : > { %v1495_v12 = vadd.f32 %v1494_v63, %v1464_v10  ;;  %v1427_v13 = vadd.f32 %v1869_v11, %v1426_v9  ;;  %v1465_v14 = vmul.f32 %v1869_v11, %v1869_v11 }
 0x126   : > { %v1804_v15 = vpop.f32.mrb[16].mxu1  ;;  %v1428_v0 = vadd.f32 %v1866_v59, %v1427_v13  ;;  %v1496_v17 = vadd.f32 %v1495_v12, %v1465_v14  ;;  %v1838_v18 = vpop.f32.mrb[16].mxu0 }
 0x127   : > { %v830_v19 = vpop.f32.mrb[17].mxu1  ;;  %v1870_v1 = vadd.f32 %v1838_v18, %v1804_v15  ;;  %v1256_v20 = vpop.f32.mrb[17].mxu0 }
 0x128   : > { %v1805_v21 = vpop.f32.mrb[18].mxu1  ;;  %v1497_v2 = vadd.f32 %v1496_v17, %v1466_v16  ;;  %v1871_v23 = vadd.f32 %v1256_v20, %v830_v19  ;;  %v1429_v24 = vadd.f32 %v1868_v62, %v1428_v0  ;;  %v1839_v25 = vpop.f32.mrb[18].mxu0 }
 0x129   : > { %v833_v26 = vpop.f32.mrb[19].mxu1  ;;  %v1872_v27 = vadd.f32 %v1839_v25, %v1805_v21  ;;  %v1259_v3 = vpop.f32.mrb[19].mxu0  ;;  %v1470_v36 = vmul.f32 %v1870_v1, %v1870_v1 }
 0x12a   : > { %v1430_v28 = vadd.f32 %v1871_v23, %v1429_v24  ;;  %v1468_v29 = vmul.f32 %v1871_v23, %v1871_v23  ;;  %v1498_v30 = vadd.f32 %v1497_v2, %v1467_v22  ;;  %v1873_v31 = vadd.f32 %v1259_v3, %v833_v26 }
 0x12b   : > { %v1471_v44 = vmul.f32 %v1872_v27, %v1872_v27 }
 0x12c   : > { %v1499_v32 = vadd.f32 %v1498_v30, %v1468_v29  ;;  %v1431_v33 = vadd.f32 %v1873_v31, %v1430_v28  ;;  %v1469_v34 = vmul.f32 %v1873_v31, %v1873_v31 }
 0x12e   : > { %v1808_v35 = vpop.f32.mrb[20].mxu1  ;;  %v1432_v37 = vadd.f32 %v1870_v1, %v1431_v33  ;;  %v1500_v38 = vadd.f32 %v1499_v32, %v1469_v34  ;;  %v1842_v39 = vpop.f32.mrb[20].mxu0 }
 0x12f   : > { %v846_v40 = vpop.f32.mrb[21].mxu1  ;;  %v1874_v41 = vadd.f32 %v1842_v39, %v1808_v35  ;;  %v1272_v42 = vpop.f32.mrb[21].mxu0 }
 0x130   : > { %v1809_v43 = vpop.f32.mrb[22].mxu1  ;;  %v1501_v45 = vadd.f32 %v1500_v38, %v1470_v36  ;;  %v1875_v46 = vadd.f32 %v1272_v42, %v846_v40  ;;  %v1433_v47 = vadd.f32 %v1872_v27, %v1432_v37  ;;  %v1843_v48 = vpop.f32.mrb[22].mxu0 }
 0x131   : > { %v849_v49 = vpop.f32.mrb[23].mxu1  ;;  %v1876_v50 = vadd.f32 %v1843_v48, %v1809_v43  ;;  %v1275_v51 = vpop.f32.mrb[23].mxu0  ;;  %v1474_v60 = vmul.f32 %v1874_v41, %v1874_v41 }
 0x132   : > { %v1434_v52 = vadd.f32 %v1875_v46, %v1433_v47  ;;  %v1472_v53 = vmul.f32 %v1875_v46, %v1875_v46  ;;  %v1502_v54 = vadd.f32 %v1501_v45, %v1471_v44  ;;  %v1877_v55 = vadd.f32 %v1275_v51, %v849_v49 }
 0x133   : > { %v1475_v9 = vmul.f32 %v1876_v50, %v1876_v50 }
 0x134   : > { %v1503_v56 = vadd.f32 %v1502_v54, %v1472_v53  ;;  %v1435_v57 = vadd.f32 %v1877_v55, %v1434_v52  ;;  %v1473_v58 = vmul.f32 %v1877_v55, %v1877_v55 }
 0x136   : > { %v1812_v59 = vpop.f32.mrb[24].mxu1  ;;  %v1436_v4 = vadd.f32 %v1874_v41, %v1435_v57  ;;  %v1504_v5 = vadd.f32 %v1503_v56, %v1473_v58  ;;  %v1846_v61 = vpop.f32.mrb[24].mxu0 }
 0x137   : > { %v862_v6 = vpop.f32.mrb[25].mxu1  ;;  %v1878_v7 = vadd.f32 %v1846_v61, %v1812_v59  ;;  %v1288_v62 = vpop.f32.mrb[25].mxu0 }
 0x138   : > { %v1813_v8 = vpop.f32.mrb[26].mxu1  ;;  %v1505_v10 = vadd.f32 %v1504_v5, %v1474_v60  ;;  %v1879_v63 = vadd.f32 %v1288_v62, %v862_v6  ;;  %v1437_v11 = vadd.f32 %v1876_v50, %v1436_v4  ;;  %v1847_v12 = vpop.f32.mrb[26].mxu0  ;;  %v1521_v5 = vld [vmem:[%s2170_s27] sm:$0x3] }
 0x139   : > { %v865_v13 = vpop.f32.mrb[27].mxu1  ;;  %v1880_v14 = vadd.f32 %v1847_v12, %v1813_v8  ;;  %v1291_v15 = vpop.f32.mrb[27].mxu0  ;;  %v1478_v22 = vmul.f32 %v1878_v7, %v1878_v7 }
 0x13a   : > { %v1438_v16 = vadd.f32 %v1879_v63, %v1437_v11  ;;  %v1476_v0 = vmul.f32 %v1879_v63, %v1879_v63  ;;  %v1506_v17 = vadd.f32 %v1505_v10, %v1475_v9  ;;  %v1881_v18 = vadd.f32 %v1291_v15, %v865_v13 }
 0x13b   : > { %v1479_v28 = vmul.f32 %v1880_v14, %v1880_v14 }
 0x13c   : > { %v1507_v19 = vadd.f32 %v1506_v17, %v1476_v0  ;;  %v1439_v1 = vadd.f32 %v1881_v18, %v1438_v16  ;;  %v1477_v20 = vmul.f32 %v1881_v18, %v1881_v18 }
 0x13e   : > { %v1816_v21 = vpop.f32.mrb[28].mxu1  ;;  %v1440_v2 = vadd.f32 %v1878_v7, %v1439_v1  ;;  %v1508_v23 = vadd.f32 %v1507_v19, %v1477_v20  ;;  %v1850_v24 = vpop.f32.mrb[28].mxu0 }
 0x13f   : > { %v878_v25 = vpop.f32.mrb[29].mxu1  ;;  %v1882_v26 = vadd.f32 %v1850_v24, %v1816_v21  ;;  %v1304_v27 = vpop.f32.mrb[29].mxu0 }
 0x140   : > { %v1817_v3 = vpop.f32.mrb[30].mxu1  ;;  %v1509_v29 = vadd.f32 %v1508_v23, %v1478_v22  ;;  %v1883_v30 = vadd.f32 %v1304_v27, %v878_v25  ;;  %v1441_v31 = vadd.f32 %v1880_v14, %v1440_v2  ;;  %v1851_v32 = vpop.f32.mrb[30].mxu0 }
 0x141   : > { %v881_v33 = vpop.f32.mrb[31].mxu1  ;;  %v1884_v34 = vadd.f32 %v1851_v32, %v1817_v3  ;;  %v1307_v35 = vpop.f32.mrb[31].mxu0  ;;  %v1482_v43 = vmul.f32 %v1882_v26, %v1882_v26 }
 0x142   : > { %v1442_v36 = vadd.f32 %v1883_v30, %v1441_v31  ;;  %v1480_v37 = vmul.f32 %v1883_v30, %v1883_v30  ;;  %v1510_v38 = vadd.f32 %v1509_v29, %v1479_v28  ;;  %v1885_v39 = vadd.f32 %v1307_v35, %v881_v33 }
 0x143   : > { %v1483_v46 = vmul.f32 %v1884_v34, %v1884_v34 }
 0x144   : > { %v1511_v40 = vadd.f32 %v1510_v38, %v1480_v37  ;;  %v1443_v41 = vadd.f32 %v1885_v39, %v1442_v36  ;;  %v1481_v42 = vmul.f32 %v1885_v39, %v1885_v39 }
 0x146   : > { %v1444_v44 = vadd.f32 %v1882_v26, %v1443_v41  ;;  %v1512_v45 = vadd.f32 %v1511_v40, %v1481_v42 }
 0x148   : > { %v1445_v47 = vadd.f32 %v1884_v34, %v1444_v44  ;;  %v1513_v48 = vadd.f32 %v1512_v45, %v1482_v43 }
 0x14a   : > { %v1446_v49 = vrot.slane %v1445_v47, 4  ;;  %v1514_v50 = vadd.f32 %v1513_v48, %v1483_v46 }
 0x14c   : > { %v1447_v51 = vadd.f32 %v1446_v49, %v1445_v47  ;;  %v1515_v52 = vrot.slane %v1514_v50, 4 }
 0x14e   : > { %v1448_v53 = vrot.slane %v1447_v51, 2  ;;  %v1516_v54 = vadd.f32 %v1515_v52, %v1514_v50 }
 0x150   : > { %v1449_v55 = vadd.f32 %v1448_v53, %v1447_v51  ;;  %v1517_v56 = vrot.slane %v1516_v54, 2 }
 0x152   : > { %v1450_v57 = vrot.slane %v1449_v55, 1  ;;  %v1518_v58 = vadd.f32 %v1517_v56, %v1516_v54 }
 0x154   : > { %v1519_v59 = vrot.slane %v1518_v58, 1  ;;  %v1451_v60 = vadd.f32 %v1450_v57, %v1449_v55 }
 0x156   : > { %v1520_v4 = vadd.f32 %v1519_v59, %v1518_v58 }
 0x158   : > { %v1523_v61 = vsel %vm1522_vm1, %v1451_v60, %v1520_v4 }
 0x159   : > { %v1524_v6 = vadd.f32 %v1523_v61, %v1521_v5 }
 0x15b   : > { %1525 = vst [vmem:[%s2170_s27] sm:$0x3] %v1524_v6 }
 0x15c PF: > { %s12_s11 = sadd.s32 1, %s2016_s11   ;;  %s2193_s9 = smov %s2012_s10 }
 0x15d   : > { %p9_p6 = scmp.ge.s32.totalorder %s12_s11, 4   ;;  %s2194_s10 = smov %s2196_s12 }
 0x15f   :  { %11 = sbr.rel (!%p9_p6) target bundleno = 2 (0x2), region = 64 }

// kernel: conv_block_forward.3
= control target key start
LH: loop header
LB: loop body
LE: loop exit
PB: predicated region body
PF: predicated region fallthrough
CT: control target
= control target key end

     0   :  { %s2071_s15 = smov 0   ;;  %s2302_s0 = inlined_call_operand.vmem [shape: f32[1,128], index: 0, kind: input, shape index: {}]   ;;  %s2303_s1 = inlined_call_operand.vmem [shape: f32[1,128], index: 1, kind: input, shape index: {}]   ;;  %s2304_s2 = inlined_call_operand.vmem [shape: bf16[576,16], index: 2, kind: input, shape index: {}]   ;;  %s2305_s3 = inlined_call_operand.vmem [shape: bf16[3,16,128], index: 3, kind: input, shape index: {}]   ;;  %s2306_s4 = inlined_call_operand.vmem [shape: f32[2,64,128], index: 4, kind: output, shape index: {}]  }
   0x1 LB: > { %s2077_s16 = sadd.s32 4294967295, %s2044_s15   ;;  %p1648_p0 = scmp.ge.s32.totalorder %s2044_s15, 1  ;;  %s2044_s15 = sphi %s2071_s15, %s14_s15  }
   0x2   : > { %p163_p1 = scmp.lt.s32.totalorder %s2044_s15, 3 }
   0x4   : > { %p164_p2 = pnand %p1648_p0, %p163_p1 }
   0x5   : > { %v1987_v0 = vld [vmem:[%s2305_s3] sm:$0xff] (!%p164_p2)   ;;  %s189_s19 = smul.u32 (!%p164_p2), 36, %s2077_s16  ;;  %v1988_v1 = vld [vmem:[%s2305_s3 + $0x8] sm:$0xff] (!%p164_p2)   ;;  %v1991_v2 = vld [vmem:[%s2305_s3 + $0x10] sm:$0xff] (!%p164_p2)   ;;  %vm321_vm0 = vcmask (!%p164_p2), 130048   ;;  %p195_p4 = scmp.lt.s32.totalorder (!%p164_p2), %s2077_s16, 1 }
   0x6   : > { %167 = sbr.rel (%p164_p2) target bundleno = 334 (0x14e), region = 36  ;;  %1811 = vmatprep.subr.bf16.mxu1 (!%p164_p2), %v1987_v0  ;;  %1845 = vmatprep.subr.bf16.mxu0 (!%p164_p2), %v1988_v1 }
   0x7   : > { %p190_p3 = scmp.lt.s32.totalorder (!%p164_p2), %s189_s19, 71  ;;  %1812 = vmatpush3.bf16.msra.mxu1 (!%p164_p2), %v1987_v0  ;;  %1846 = vmatpush3.bf16.msra.mxu0 (!%p164_p2), %v1988_v1 }
   0x8   : > { %1913 = vmatprep.subr.bf16.mxu1 (!%p164_p2), %v1988_v1  ;;  %1879 = vmatprep.subr.bf16.mxu0 (!%p164_p2), %v1991_v2 }
   0xd   : > { %s2308_s19 = smov (!%p190_p3, %s189_s19), 71  ;;  %s2310_s16 = smov (!%p195_p4, %s2077_s16), 1 }
   0xe   : > { %s1649_s24 = sshll.u32 %s2308_s19, 2  ;;  %s1759_s6 = sshll.u32 %s2310_s16, 6 }
   0xf   : > { %s2094_s27 = scalar_lea.vmem %s2304_s2, %s1649_s24  ;;  %s2229_s9 = scalar_lea.vmem %s2306_s4, %s1759_s6 }
  0x10   : > { %v1989_v3 = vld [vmem:[%s2094_s27] sm:$0xff]   ;;  %v1990_v4 = vld [vmem:[%s2094_s27 + $0x8] sm:$0xff]   ;;  %v1993_v6 = vld [vmem:[%s2094_s27 + $0x10] sm:$0xff]  }
  0x11   : > { %1813 = vmatprep.mubr.msk.bf16.mxu1 %vm321_vm0, %v1989_v3  ;;  %v1992_v5 = vld [vmem:[%s2094_s27 + $0x8] sm:$0xff]   ;;  %1847 = vmatprep.mubr.msk.bf16.mxu0 %vm321_vm0, %v1990_v4  ;;  %v1994_v7 = vld [vmem:[%s2094_s27 + $0x10] sm:$0xff]   ;;  %v1995_v8 = vld [vmem:[%s2094_s27 + $0x18] sm:$0xff]  }
  0x12   : > { %1814 = vmatmul.mubr.msk.bf16.vlgmr.msra.gmra.mrb[0].mxu1 %vm321_vm0, %v1992_v5  ;;  %1848 = vmatmul.mubr.msk.bf16.vlgmr.msra.gmra.mrb[0].mxu0 %vm321_vm0, %v1993_v6  ;;  %v1996_v9 = vld [vmem:[%s2094_s27 + $0x18] sm:$0xff]   ;;  %v1997_v10 = vld [vmem:[%s2094_s27 + $0x20] sm:$0xff]   ;;  %v1999_v12 = vld [vmem:[%s2094_s27 + $0x28] sm:$0xff]  }
  0x13   : > { %1914 = vmatpush3.bf16.msra.mxu1 %v1988_v1  ;;  %1880 = vmatpush3.bf16.msra.mxu0 %v1991_v2  ;;  %v1998_v11 = vld [vmem:[%s2094_s27 + $0x20] sm:$0xff]   ;;  %v2000_v13 = vld [vmem:[%s2094_s27 + $0x28] sm:$0xff]   ;;  %v2001_v14 = vld [vmem:[%s2094_s27 + $0x30] sm:$0xff]  }
  0x14   : > { %1817 = vmatprep.mubr.msk.bf16.mxu1 %vm321_vm0, %v1994_v7  ;;  %1851 = vmatprep.mubr.msk.bf16.mxu0 %vm321_vm0, %v1995_v8  ;;  %v2002_v15 = vld [vmem:[%s2094_s27 + $0x30] sm:$0xff]   ;;  %v2003_v16 = vld [vmem:[%s2094_s27 + $0x38] sm:$0xff]   ;;  %v2005_v18 = vld [vmem:[%s2094_s27 + $0x40] sm:$0xff]  }
  0x15   : > { %v2004_v17 = vld [vmem:[%s2094_s27 + $0x38] sm:$0xff]   ;;  %v2006_v19 = vld [vmem:[%s2094_s27 + $0x40] sm:$0xff]   ;;  %v2007_v20 = vld [vmem:[%s2094_s27 + $0x10] sm:$0xff]  }
  0x16   : > { %v2008_v21 = vld [vmem:[%s2094_s27 + $0x48] sm:$0xff]   ;;  %v2009_v22 = vld [vmem:[%s2094_s27 + $0x18] sm:$0xff]   ;;  %v2010_v23 = vld [vmem:[%s2094_s27 + $0x50] sm:$0xff]  }
  0x17   : > { %v2011_v24 = vld [vmem:[%s2094_s27 + $0x20] sm:$0xff]   ;;  %v2012_v25 = vld [vmem:[%s2094_s27 + $0x58] sm:$0xff]   ;;  %v2013_v26 = vld [vmem:[%s2094_s27 + $0x28] sm:$0xff]  }
  0x18   : > { %v2014_v27 = vld [vmem:[%s2094_s27 + $0x60] sm:$0xff]   ;;  %v2015_v28 = vld [vmem:[%s2094_s27 + $0x30] sm:$0xff]   ;;  %v2016_v29 = vld [vmem:[%s2094_s27 + $0x68] sm:$0xff]  }
  0x19   : > { %v2017_v30 = vld [vmem:[%s2094_s27 + $0x38] sm:$0xff]   ;;  %v2018_v31 = vld [vmem:[%s2094_s27 + $0x70] sm:$0xff]   ;;  %v2019_v32 = vld [vmem:[%s2094_s27 + $0x40] sm:$0xff]  }
  0x1a   : > { %1818 = vmatmul.mubr.msk.bf16.gmra.mrb[4].mxu1 %vm321_vm0, %v1996_v9  ;;  %1852 = vmatmul.mubr.msk.bf16.gmra.mrb[4].mxu0 %vm321_vm0, %v1997_v10  ;;  %v2020_v33 = vld [vmem:[%s2094_s27 + $0x78] sm:$0xff]   ;;  %v2021_v34 = vld [vmem:[%s2094_s27 + $0x48] sm:$0xff]   ;;  %v2023_v36 = vld [vmem:[%s2094_s27 + $0x50] sm:$0xff]  }
  0x1b   : > { %1821 = vmatprep.mubr.msk.bf16.mxu1 %vm321_vm0, %v1998_v11  ;;  %1855 = vmatprep.mubr.msk.bf16.mxu0 %vm321_vm0, %v1999_v12  ;;  %v2022_v35 = vld [vmem:[%s2094_s27 + $0x48] sm:$0xff]   ;;  %v2024_v37 = vld [vmem:[%s2094_s27 + $0x50] sm:$0xff]   ;;  %v2025_v38 = vld [vmem:[%s2094_s27 + $0x58] sm:$0xff]  }
  0x1c   : > { %v2026_v39 = vld [vmem:[%s2094_s27 + $0x58] sm:$0xff]   ;;  %v2027_v40 = vld [vmem:[%s2094_s27 + $0x60] sm:$0xff]   ;;  %v2029_v42 = vld [vmem:[%s2094_s27 + $0x68] sm:$0xff]  }
  0x1d   : > { %v2028_v41 = vld [vmem:[%s2094_s27 + $0x60] sm:$0xff]   ;;  %v2030_v43 = vld [vmem:[%s2094_s27 + $0x68] sm:$0xff]   ;;  %v2031_v44 = vld [vmem:[%s2094_s27 + $0x70] sm:$0xff]  }
  0x1e   : > { %v2032_v45 = vld [vmem:[%s2094_s27 + $0x70] sm:$0xff]   ;;  %v2033_v46 = vld [vmem:[%s2094_s27 + $0x78] sm:$0xff]   ;;  %v2035_v48 = vld [vmem:[%s2094_s27 + $0x80] sm:$0xff]  }
  0x1f   : > { %v2034_v47 = vld [vmem:[%s2094_s27 + $0x78] sm:$0xff]   ;;  %v2036_v49 = vld [vmem:[%s2094_s27 + $0x80] sm:$0xff]   ;;  %v2037_v50 = vld [vmem:[%s2094_s27 + $0x88] sm:$0xff]  }
  0x20   : > { %v2207_v4 = vld [vmem:[%s2302_s0] ss:$0 sm:$0xff] }
  0x21   : > { %v2212_v7 = vld [vmem:[%s2303_s1] ss:$0 sm:$0xff] }
  0x22   : > { %1822 = vmatmul.mubr.msk.bf16.gmra.mrb[8].mxu1 %vm321_vm0, %v2000_v13  ;;  %1856 = vmatmul.mubr.msk.bf16.gmra.mrb[8].mxu0 %vm321_vm0, %v2001_v14 }
  0x23   : > { %1825 = vmatprep.mubr.msk.bf16.mxu1 %vm321_vm0, %v2002_v15  ;;  %1859 = vmatprep.mubr.msk.bf16.mxu0 %vm321_vm0, %v2003_v16 }
  0x2a   : > { %1826 = vmatmul.mubr.msk.bf16.gmra.mrb[12].mxu1 %vm321_vm0, %v2004_v17  ;;  %1860 = vmatmul.mubr.msk.bf16.gmra.mrb[12].mxu0 %vm321_vm0, %v2005_v18 }
  0x2b   : > { %1829 = vmatprep.mubr.msk.bf16.mxu1 %vm321_vm0, %v2006_v19  ;;  %1881 = vmatprep.mubr.msk.bf16.mxu0 %vm321_vm0, %v2007_v20 }
  0x32   : > { %1830 = vmatmul.mubr.msk.bf16.gmra.mrb[16].mxu1 %vm321_vm0, %v2008_v21  ;;  %1882 = vmatmul.mubr.msk.bf16.vlgmr.msra.gmra.mrb[0].mxu0 %vm321_vm0, %v2009_v22 }
  0x33   : > { %1833 = vmatprep.mubr.msk.bf16.mxu1 %vm321_vm0, %v2010_v23  ;;  %1885 = vmatprep.mubr.msk.bf16.mxu0 %vm321_vm0, %v2011_v24 }
  0x3a   : > { %1834 = vmatmul.mubr.msk.bf16.gmra.mrb[20].mxu1 %vm321_vm0, %v2012_v25  ;;  %1886 = vmatmul.mubr.msk.bf16.gmra.mrb[4].mxu0 %vm321_vm0, %v2013_v26 }
  0x3b   : > { %1837 = vmatprep.mubr.msk.bf16.mxu1 %vm321_vm0, %v2014_v27  ;;  %1889 = vmatprep.mubr.msk.bf16.mxu0 %vm321_vm0, %v2015_v28 }
  0x42   : > { %1838 = vmatmul.mubr.msk.bf16.gmra.mrb[24].mxu1 %vm321_vm0, %v2016_v29  ;;  %1890 = vmatmul.mubr.msk.bf16.gmra.mrb[8].mxu0 %vm321_vm0, %v2017_v30 }
  0x43   : > { %1841 = vmatprep.mubr.msk.bf16.mxu1 %vm321_vm0, %v2018_v31  ;;  %1893 = vmatprep.mubr.msk.bf16.mxu0 %vm321_vm0, %v2019_v32 }
  0x4a   : > { %1842 = vmatmul.mubr.msk.bf16.gmra.mrb[28].mxu1 %vm321_vm0, %v2020_v33  ;;  %1894 = vmatmul.mubr.msk.bf16.gmra.mrb[12].mxu0 %vm321_vm0, %v2021_v34 }
  0x4b   : > { %1863 = vmatprep.mubr.msk.bf16.mxu1 %vm321_vm0, %v2022_v35  ;;  %1897 = vmatprep.mubr.msk.bf16.mxu0 %vm321_vm0, %v2023_v36 }
  0x52   : > { %1864 = vmatmul.mubr.msk.bf16.vlgmr.msra.gmra.mrb[16].mxu1 %vm321_vm0, %v2024_v37  ;;  %1898 = vmatmul.mubr.msk.bf16.gmra.mrb[16].mxu0 %vm321_vm0, %v2025_v38 }
  0x53   : > { %1867 = vmatprep.mubr.msk.bf16.mxu1 %vm321_vm0, %v2026_v39  ;;  %1901 = vmatprep.mubr.msk.bf16.mxu0 %vm321_vm0, %v2027_v40 }
  0x5a   : > { %1868 = vmatmul.mubr.msk.bf16.gmra.mrb[20].mxu1 %vm321_vm0, %v2028_v41  ;;  %1902 = vmatmul.mubr.msk.bf16.gmra.mrb[20].mxu0 %vm321_vm0, %v2029_v42 }
  0x5b   : > { %1871 = vmatprep.mubr.msk.bf16.mxu1 %vm321_vm0, %v2030_v43  ;;  %1905 = vmatprep.mubr.msk.bf16.mxu0 %vm321_vm0, %v2031_v44 }
  0x62   : > { %1872 = vmatmul.mubr.msk.bf16.gmra.mrb[24].mxu1 %vm321_vm0, %v2032_v45  ;;  %1906 = vmatmul.mubr.msk.bf16.gmra.mrb[24].mxu0 %vm321_vm0, %v2033_v46 }
  0x63   : > { %1875 = vmatprep.mubr.msk.bf16.mxu1 %vm321_vm0, %v2034_v47  ;;  %1909 = vmatprep.mubr.msk.bf16.mxu0 %vm321_vm0, %v2035_v48 }
  0x6a   : > { %1876 = vmatmul.mubr.msk.bf16.gmra.mrb[28].mxu1 %vm321_vm0, %v2036_v49  ;;  %1910 = vmatmul.mubr.msk.bf16.gmra.mrb[28].mxu0 %vm321_vm0, %v2037_v50 }
  0xe5   : > { %v1815_v51 = vpop.f32.mrb[0].mxu1 }
  0xe6   : > { %v404_v52 = vpop.f32.mrb[1].mxu1 }
  0xe7   : > { %v1816_v53 = vpop.f32.mrb[2].mxu1 }
  0xe8   : > { %v407_v54 = vpop.f32.mrb[3].mxu1 }
  0xed   : > { %v1819_v55 = vpop.f32.mrb[4].mxu1 }
  0xee   : > { %v420_v56 = vpop.f32.mrb[5].mxu1 }
  0xef   : > { %v1820_v57 = vpop.f32.mrb[6].mxu1 }
  0xf0   : > { %v423_v58 = vpop.f32.mrb[7].mxu1 }
  0xf5   : > { %v1823_v59 = vpop.f32.mrb[8].mxu1 }
  0xf6   : > { %v436_v60 = vpop.f32.mrb[9].mxu1 }
  0xf7   : > { %v2192_v61 = vpop.f32.mrb[10].mxu1 }
  0xf8   : > { %v2194_v62 = vpop.f32.mrb[11].mxu1 }
  0xfd   : > { %v2196_v63 = vpop.f32.mrb[12].mxu1 }
  0xfe   : > { %v2198_v0 = vpop.f32.mrb[13].mxu1 }
  0xff   : > { %v2200_v1 = vpop.f32.mrb[14].mxu1 }
 0x100   : > { %v2202_v2 = vpop.f32.mrb[15].mxu1 }
 0x105   : > { %v1883_v3 = vpop.f32.mrb[0].mxu0 }
 0x106   : > { %v1915_v5 = vadd.f32 %v1883_v3, %v1815_v51  ;;  %v1224_v6 = vpop.f32.mrb[1].mxu0 }
 0x107   : > { %v1916_v8 = vadd.f32 %v1224_v6, %v404_v52  ;;  %v1884_v9 = vpop.f32.mrb[2].mxu0 }
 0x108   : > { %v1438_v10 = vmul.f32 %v1915_v5, %v2207_v4  ;;  %v1917_v11 = vadd.f32 %v1884_v9, %v1816_v53  ;;  %v1227_v12 = vpop.f32.mrb[3].mxu0 }
 0x109   : > { %v1424_v13 = vmul.f32 %v1916_v8, %v2207_v4  ;;  %v1918_v14 = vadd.f32 %v1227_v12, %v407_v54 }
 0x10a   : > { %v1439_v15 = vadd.f32 %v2212_v7, %v1438_v10  ;;  %v1442_v16 = vmul.f32 %v1917_v11, %v2207_v4 }
 0x10b   : > { %v1431_v17 = vadd.f32 %v2212_v7, %v1424_v13  ;;  %v1434_v18 = vmul.f32 %v1918_v14, %v2207_v4 }
 0x10c   : > { %v1443_v19 = vadd.f32 %v2212_v7, %v1442_v16  ;;  %v1440_v22 = vmax.f32 %v1439_v15, 0.0 }
 0x10d   : > { %v1435_v20 = vadd.f32 %v2212_v7, %v1434_v18  ;;  %v1887_v21 = vpop.f32.mrb[4].mxu0  ;;  %v1432_v26 = vmax.f32 %v1431_v17, 0.0 }
 0x10e   : > { %v1444_v23 = vmax.f32 %v1443_v19, 0.0  ;;  %v1919_v24 = vadd.f32 %v1887_v21, %v1819_v55  ;;  %v1240_v25 = vpop.f32.mrb[5].mxu0 }
 0x10f   : > { %v1436_v27 = vmax.f32 %v1435_v20, 0.0  ;;  %v1920_v28 = vadd.f32 %v1240_v25, %v420_v56  ;;  %v1888_v29 = vpop.f32.mrb[6].mxu0 }
 0x110   : > { %v1446_v30 = vmax.f32 %v1440_v22, %v1444_v23  ;;  %v1458_v31 = vmul.f32 %v1919_v24, %v2207_v4  ;;  %v1921_v32 = vadd.f32 %v1888_v29, %v1820_v57  ;;  %v1243_v33 = vpop.f32.mrb[7].mxu0 }
 0x111   : > { %v1445_v34 = vmax.f32 %v1432_v26, %v1436_v27  ;;  %v1450_v35 = vmul.f32 %v1920_v28, %v2207_v4  ;;  %v1922_v36 = vadd.f32 %v1243_v33, %v423_v58 }
 0x112   : > { %v1459_v37 = vadd.f32 %v2212_v7, %v1458_v31  ;;  %v1462_v38 = vmul.f32 %v1921_v32, %v2207_v4 }
 0x113   : > { %v1447_v39 = vmax.f32 %v1445_v34, %v1446_v30  ;;  %v1451_v40 = vadd.f32 %v2212_v7, %v1450_v35  ;;  %v1454_v41 = vmul.f32 %v1922_v36, %v2207_v4 }
 0x114   : > { %v1463_v42 = vadd.f32 %v2212_v7, %v1462_v38  ;;  %v1460_v45 = vmax.f32 %v1459_v37, 0.0 }
 0x115   : > { %1448 = vst [vmem:[%s2229_s9] sm:$0xff] %v1447_v39  ;;  %v1455_v43 = vadd.f32 %v2212_v7, %v1454_v41  ;;  %v1891_v44 = vpop.f32.mrb[8].mxu0  ;;  %v1452_v49 = vmax.f32 %v1451_v40, 0.0 }
 0x116   : > { %v1464_v46 = vmax.f32 %v1463_v42, 0.0  ;;  %v1923_v47 = vadd.f32 %v1891_v44, %v1823_v59  ;;  %v1256_v48 = vpop.f32.mrb[9].mxu0 }
 0x117   : > { %v1456_v50 = vmax.f32 %v1455_v43, 0.0  ;;  %v1924_v51 = vadd.f32 %v1256_v48, %v436_v60  ;;  %v1892_v52 = vpop.f32.mrb[10].mxu0 }
 0x118   : > { %v1466_v53 = vmax.f32 %v1460_v45, %v1464_v46  ;;  %v1478_v54 = vmul.f32 %v1923_v47, %v2207_v4  ;;  %v1925_v55 = vadd.f32 %v1892_v52, %v2192_v61  ;;  %v1259_v56 = vpop.f32.mrb[11].mxu0 }
 0x119   : > { %v1465_v57 = vmax.f32 %v1452_v49, %v1456_v50  ;;  %v1470_v58 = vmul.f32 %v1924_v51, %v2207_v4  ;;  %v1926_v3 = vadd.f32 %v1259_v56, %v2194_v62 }
 0x11a   : > { %v1479_v5 = vadd.f32 %v2212_v7, %v1478_v54  ;;  %v1482_v59 = vmul.f32 %v1925_v55, %v2207_v4 }
 0x11b   : > { %v1467_v6 = vmax.f32 %v1465_v57, %v1466_v53  ;;  %v1471_v8 = vadd.f32 %v2212_v7, %v1470_v58  ;;  %v1474_v60 = vmul.f32 %v1926_v3, %v2207_v4 }
 0x11c   : > { %v1483_v9 = vadd.f32 %v2212_v7, %v1482_v59  ;;  %v1480_v11 = vmax.f32 %v1479_v5, 0.0 }
 0x11d   : > { %1468 = vst [vmem:[%s2229_s9 + $0x8] sm:$0xff] %v1467_v6  ;;  %v1475_v61 = vadd.f32 %v2212_v7, %v1474_v60  ;;  %v1895_v10 = vpop.f32.mrb[12].mxu0  ;;  %v1472_v14 = vmax.f32 %v1471_v8, 0.0 }
 0x11e   : > { %v1484_v12 = vmax.f32 %v1483_v9, 0.0  ;;  %v1927_v13 = vadd.f32 %v1895_v10, %v2196_v63  ;;  %v1272_v62 = vpop.f32.mrb[13].mxu0 }
 0x11f   : > { %v1476_v15 = vmax.f32 %v1475_v61, 0.0  ;;  %v1928_v16 = vadd.f32 %v1272_v62, %v2198_v0  ;;  %v1896_v17 = vpop.f32.mrb[14].mxu0 }
 0x120   : > { %v1486_v18 = vmax.f32 %v1480_v11, %v1484_v12  ;;  %v1498_v19 = vmul.f32 %v1927_v13, %v2207_v4  ;;  %v1929_v20 = vadd.f32 %v1896_v17, %v2200_v1  ;;  %v1275_v21 = vpop.f32.mrb[15].mxu0 }
 0x121   : > { %v1485_v22 = vmax.f32 %v1472_v14, %v1476_v15  ;;  %v1490_v23 = vmul.f32 %v1928_v16, %v2207_v4  ;;  %v1930_v24 = vadd.f32 %v1275_v21, %v2202_v2 }
 0x122   : > { %v1499_v63 = vadd.f32 %v2212_v7, %v1498_v19  ;;  %v1502_v25 = vmul.f32 %v1929_v20, %v2207_v4 }
 0x123   : > { %v1487_v26 = vmax.f32 %v1485_v22, %v1486_v18  ;;  %v1491_v0 = vadd.f32 %v2212_v7, %v1490_v23  ;;  %v1494_v27 = vmul.f32 %v1930_v24, %v2207_v4 }
 0x124   : > { %v1503_v28 = vadd.f32 %v2212_v7, %v1502_v25  ;;  %v1500_v32 = vmax.f32 %v1499_v63, 0.0 }
 0x125   : > { %v1865_v29 = vpop.f32.mrb[16].mxu1  ;;  %1488 = vst [vmem:[%s2229_s9 + $0x10] sm:$0xff] %v1487_v26  ;;  %v1495_v1 = vadd.f32 %v2212_v7, %v1494_v27  ;;  %v1899_v30 = vpop.f32.mrb[16].mxu0  ;;  %v1492_v36 = vmax.f32 %v1491_v0, 0.0 }
 0x126   : > { %v862_v31 = vpop.f32.mrb[17].mxu1  ;;  %v1504_v33 = vmax.f32 %v1503_v28, 0.0  ;;  %v1931_v2 = vadd.f32 %v1899_v30, %v1865_v29  ;;  %v1288_v34 = vpop.f32.mrb[17].mxu0 }
 0x127   : > { %v1866_v35 = vpop.f32.mrb[18].mxu1  ;;  %v1496_v37 = vmax.f32 %v1495_v1, 0.0  ;;  %v1932_v38 = vadd.f32 %v1288_v34, %v862_v31  ;;  %v1900_v39 = vpop.f32.mrb[18].mxu0 }
 0x128   : > { %v865_v40 = vpop.f32.mrb[19].mxu1  ;;  %v1506_v41 = vmax.f32 %v1500_v32, %v1504_v33  ;;  %v1518_v42 = vmul.f32 %v1931_v2, %v2207_v4  ;;  %v1933_v43 = vadd.f32 %v1900_v39, %v1866_v35  ;;  %v1291_v44 = vpop.f32.mrb[19].mxu0 }
 0x129   : > { %v1505_v45 = vmax.f32 %v1492_v36, %v1496_v37  ;;  %v1510_v46 = vmul.f32 %v1932_v38, %v2207_v4  ;;  %v1934_v47 = vadd.f32 %v1291_v44, %v865_v40 }
 0x12a   : > { %v1519_v48 = vadd.f32 %v2212_v7, %v1518_v42  ;;  %v1522_v49 = vmul.f32 %v1933_v43, %v2207_v4 }
 0x12b   : > { %v1507_v50 = vmax.f32 %v1505_v45, %v1506_v41  ;;  %v1511_v51 = vadd.f32 %v2212_v7, %v1510_v46  ;;  %v1514_v52 = vmul.f32 %v1934_v47, %v2207_v4 }
 0x12c   : > { %v1523_v53 = vadd.f32 %v2212_v7, %v1522_v49  ;;  %v1520_v58 = vmax.f32 %v1519_v48, 0.0 }
 0x12d   : > { %v1869_v54 = vpop.f32.mrb[20].mxu1  ;;  %1508 = vst [vmem:[%s2229_s9 + $0x18] sm:$0xff] %v1507_v50  ;;  %v1515_v55 = vadd.f32 %v2212_v7, %v1514_v52  ;;  %v1903_v56 = vpop.f32.mrb[20].mxu0  ;;  %v1512_v8 = vmax.f32 %v1511_v51, 0.0 }
 0x12e   : > { %v878_v57 = vpop.f32.mrb[21].mxu1  ;;  %v1524_v3 = vmax.f32 %v1523_v53, 0.0  ;;  %v1935_v5 = vadd.f32 %v1903_v56, %v1869_v54  ;;  %v1304_v59 = vpop.f32.mrb[21].mxu0 }
 0x12f   : > { %v1870_v6 = vpop.f32.mrb[22].mxu1  ;;  %v1516_v60 = vmax.f32 %v1515_v55, 0.0  ;;  %v1936_v9 = vadd.f32 %v1304_v59, %v878_v57  ;;  %v1904_v61 = vpop.f32.mrb[22].mxu0 }
 0x130   : > { %v881_v10 = vpop.f32.mrb[23].mxu1  ;;  %v1526_v11 = vmax.f32 %v1520_v58, %v1524_v3  ;;  %v1538_v12 = vmul.f32 %v1935_v5, %v2207_v4  ;;  %v1937_v13 = vadd.f32 %v1904_v61, %v1870_v6  ;;  %v1307_v62 = vpop.f32.mrb[23].mxu0 }
 0x131   : > { %v1525_v14 = vmax.f32 %v1512_v8, %v1516_v60  ;;  %v1530_v15 = vmul.f32 %v1936_v9, %v2207_v4  ;;  %v1938_v16 = vadd.f32 %v1307_v62, %v881_v10 }
 0x132   : > { %v1539_v17 = vadd.f32 %v2212_v7, %v1538_v12  ;;  %v1542_v18 = vmul.f32 %v1937_v13, %v2207_v4 }
 0x133   : > { %v1527_v19 = vmax.f32 %v1525_v14, %v1526_v11  ;;  %v1531_v20 = vadd.f32 %v2212_v7, %v1530_v15  ;;  %v1534_v21 = vmul.f32 %v1938_v16, %v2207_v4 }
 0x134   : > { %v1543_v22 = vadd.f32 %v2212_v7, %v1542_v18  ;;  %v1540_v26 = vmax.f32 %v1539_v17, 0.0 }
 0x135   : > { %v1873_v23 = vpop.f32.mrb[24].mxu1  ;;  %1528 = vst [vmem:[%s2229_s9 + $0x20] sm:$0xff] %v1527_v19  ;;  %v1535_v24 = vadd.f32 %v2212_v7, %v1534_v21  ;;  %v1907_v63 = vpop.f32.mrb[24].mxu0  ;;  %v1532_v1 = vmax.f32 %v1531_v20, 0.0 }
 0x136   : > { %v894_v25 = vpop.f32.mrb[25].mxu1  ;;  %v1544_v0 = vmax.f32 %v1543_v22, 0.0  ;;  %v1939_v27 = vadd.f32 %v1907_v63, %v1873_v23  ;;  %v1320_v28 = vpop.f32.mrb[25].mxu0 }
 0x137   : > { %v1874_v29 = vpop.f32.mrb[26].mxu1  ;;  %v1536_v30 = vmax.f32 %v1535_v24, 0.0  ;;  %v1940_v31 = vadd.f32 %v1320_v28, %v894_v25  ;;  %v1908_v32 = vpop.f32.mrb[26].mxu0 }
 0x138   : > { %v897_v33 = vpop.f32.mrb[27].mxu1  ;;  %v1546_v2 = vmax.f32 %v1540_v26, %v1544_v0  ;;  %v1558_v34 = vmul.f32 %v1939_v27, %v2207_v4  ;;  %v1941_v35 = vadd.f32 %v1908_v32, %v1874_v29  ;;  %v1323_v36 = vpop.f32.mrb[27].mxu0 }
 0x139   : > { %v1545_v37 = vmax.f32 %v1532_v1, %v1536_v30  ;;  %v1550_v38 = vmul.f32 %v1940_v31, %v2207_v4  ;;  %v1942_v39 = vadd.f32 %v1323_v36, %v897_v33 }
 0x13a   : > { %v1559_v40 = vadd.f32 %v2212_v7, %v1558_v34  ;;  %v1562_v41 = vmul.f32 %v1941_v35, %v2207_v4 }
 0x13b   : > { %v1547_v42 = vmax.f32 %v1545_v37, %v1546_v2  ;;  %v1551_v43 = vadd.f32 %v2212_v7, %v1550_v38  ;;  %v1554_v44 = vmul.f32 %v1942_v39, %v2207_v4 }
 0x13c   : > { %v1563_v45 = vadd.f32 %v2212_v7, %v1562_v41  ;;  %v1560_v50 = vmax.f32 %v1559_v40, 0.0 }
 0x13d   : > { %v1877_v46 = vpop.f32.mrb[28].mxu1  ;;  %1548 = vst [vmem:[%s2229_s9 + $0x28] sm:$0xff] %v1547_v42  ;;  %v1555_v47 = vadd.f32 %v2212_v7, %v1554_v44  ;;  %v1911_v48 = vpop.f32.mrb[28].mxu0  ;;  %v1552_v55 = vmax.f32 %v1551_v43, 0.0 }
 0x13e   : > { %v910_v49 = vpop.f32.mrb[29].mxu1  ;;  %v1564_v51 = vmax.f32 %v1563_v45, 0.0  ;;  %v1943_v52 = vadd.f32 %v1911_v48, %v1877_v46  ;;  %v1336_v53 = vpop.f32.mrb[29].mxu0 }
 0x13f   : > { %v1878_v54 = vpop.f32.mrb[30].mxu1  ;;  %v1556_v56 = vmax.f32 %v1555_v47, 0.0  ;;  %v1944_v57 = vadd.f32 %v1336_v53, %v910_v49  ;;  %v1912_v58 = vpop.f32.mrb[30].mxu0 }
 0x140   : > { %v913_v3 = vpop.f32.mrb[31].mxu1  ;;  %v1566_v5 = vmax.f32 %v1560_v50, %v1564_v51  ;;  %v1578_v59 = vmul.f32 %v1943_v52, %v2207_v4  ;;  %v1945_v6 = vadd.f32 %v1912_v58, %v1878_v54  ;;  %v1339_v8 = vpop.f32.mrb[31].mxu0 }
 0x141   : > { %v1565_v60 = vmax.f32 %v1552_v55, %v1556_v56  ;;  %v1570_v9 = vmul.f32 %v1944_v57, %v2207_v4  ;;  %v1946_v61 = vadd.f32 %v1339_v8, %v913_v3 }
 0x142   : > { %v1579_v10 = vadd.f32 %v2212_v7, %v1578_v59  ;;  %v1582_v11 = vmul.f32 %v1945_v6, %v2207_v4 }
 0x143   : > { %v1567_v12 = vmax.f32 %v1565_v60, %v1566_v5  ;;  %v1571_v13 = vadd.f32 %v2212_v7, %v1570_v9  ;;  %v1574_v62 = vmul.f32 %v1946_v61, %v2207_v4 }
 0x144   : > { %v1583_v14 = vadd.f32 %v2212_v7, %v1582_v11  ;;  %v1580_v16 = vmax.f32 %v1579_v10, 0.0 }
 0x145   : > { %1568 = vst [vmem:[%s2229_s9 + $0x30] sm:$0xff] %v1567_v12  ;;  %v1575_v15 = vadd.f32 %v2212_v7, %v1574_v62  ;;  %v1572_v18 = vmax.f32 %v1571_v13, 0.0 }
 0x146   : > { %v1584_v17 = vmax.f32 %v1583_v14, 0.0 }
 0x147   : > { %v1576_v19 = vmax.f32 %v1575_v15, 0.0 }
 0x148   : > { %v1586_v20 = vmax.f32 %v1580_v16, %v1584_v17 }
 0x149   : > { %v1585_v21 = vmax.f32 %v1572_v18, %v1576_v19 }
 0x14b   : > { %v1587_v22 = vmax.f32 %v1585_v21, %v1586_v20 }
 0x14d   : > { %1588 = vst [vmem:[%s2229_s9 + $0x38] sm:$0xff] %v1587_v22 }
 0x14e PF: > { %s14_s15 = sadd.s32 1, %s2044_s15  }
 0x14f   : > { %p11_p5 = scmp.ge.s32.totalorder %s14_s15, 4  }
 0x151   :  { %13 = sbr.rel (!%p11_p5) target bundleno = 1 (0x1), region = 68 }

</bundles_post_ra>
